<compile_context>
chip_gen: v7x
topology: tpu7x:2x2x1
jax: 0.10.0
libtpu: 0.0.40
codegen_flags: <defaults>
</compile_context>

<pallas_src>
import jax
import jax.numpy as jnp
from jax import lax
from jax.experimental import pallas as pl
from jax.experimental.pallas import tpu as pltpu


def _softplus(v):
    # stable softplus; BCE-with-logits(x, t) == softplus(x) - x*t
    return jnp.maximum(v, 0.0) + jnp.log1p(jnp.exp(-jnp.abs(v)))


def _make_level_kernel(*, h, w, num_classes, n_gt, r_blk, n_ri, downsample,
                       ignore_thresh, scale, label_smooth):
    """Builds the per-level Pallas kernel (static shapes baked in)."""
    hw = h * w
    gw, gh = float(w), float(h)
    ds = float(downsample)
    inv_gw, inv_gh = 1.0 / gw, 1.0 / gh
    hw_f = float(hw)
    rb128 = r_blk * 128
    delta = min(1.0 / num_classes, 1.0 / 40.0)
    f32 = jnp.float32

    def kernel(anchor_ref, gbox_ref, p_ref, t_ref, out_ref):
        b = pl.program_id(0)
        ro = pl.program_id(1)
        a = pl.program_id(2)
        ri = pl.program_id(3)

        # --- init resident per-(image, outer-tile) accumulator on first inner step ---------
        @pl.when(jnp.logical_and(a == 0, ri == 0))
        def _init():
            out_ref[...] = jnp.zeros_like(out_ref)

        # --- per-channel planes, each (r_blk, 128); cast to f32 after load ------------------
        px = p_ref[0].astype(f32)
        py = p_ref[1].astype(f32)
        pw = p_ref[2].astype(f32)
        ph = p_ref[3].astype(f32)
        pobj = p_ref[4].astype(f32)

        tx = t_ref[0].astype(f32)
        ty = t_ref[1].astype(f32)
        tw = t_ref[2].astype(f32)
        th = t_ref[3].astype(f32)
        tscale = t_ref[4].astype(f32)
        tobj = t_ref[5].astype(f32)

        aw = anchor_ref[a, 0]
        ah = anchor_ref[a, 1]

        # per-location index within this anchor's H*W plane (padded tail masked via `valid`)
        row_i = lax.broadcasted_iota(jnp.int32, (r_blk, 128), 0)
        lane_i = lax.broadcasted_iota(jnp.int32, (r_blk, 128), 1)
        tile = ro * n_ri + ri
        loc = (tile * rb128 + row_i * 128 + lane_i).astype(f32)
        valid = (loc < hw_f).astype(f32)
        # division-free floor(loc / w): exact for feature maps << 2048x2048
        gy = jnp.floor((loc + 0.5) * inv_gw)
        gx = loc - gy * gw

        sx = scale * jax.nn.sigmoid(px) - 0.5 * (scale - 1.0)
        sy = scale * jax.nn.sigmoid(py) - 0.5 * (scale - 1.0)

        # --- positive-only terms: skip whole tile when nothing is assigned here -------------
        has_pos = jnp.max(tobj) > 0.0

        @pl.when(has_pos)
        def _pos_terms():
            tscale_obj = tscale * tobj
            if abs(scale - 1.0) < 1e-10:
                # BCE(sigmoid(px), tx) == softplus(px) - px*tx
                lx = _softplus(px) - px * tx
                ly = _softplus(py) - py * ty
            else:
                lx = jnp.abs(sx - tx)
                ly = jnp.abs(sy - ty)
            out_ref[0] += tscale_obj * (lx + ly)
            out_ref[1] += tscale_obj * (jnp.abs(pw - tw) + jnp.abs(ph - th))

            # class BCE: one channel plane at a time, single running accumulator
            def cls_body(c, acc):
                pc = p_ref[5 + c].astype(f32)
                tc = t_ref[6 + c].astype(f32)
                if label_smooth:
                    # TODO(synk): hardens soft tcls to {delta, 1-delta}; matches Paddle ref
                    # for hard targets, differs if tcls carries soft (mixup) scores.
                    tc = ((1.0 - delta) * (tc > 0.0).astype(f32)
                          + delta * (tc <= 0.0).astype(f32))
                return acc + (_softplus(pc) - pc * tc)

            cls_acc = lax.fori_loop(0, num_classes, cls_body,
                                    jnp.zeros((r_blk, 128), f32),
                                    unroll=max(1, min(num_classes, 8)))
            out_ref[3] += cls_acc * tobj

        # --- decode predicted boxes to normalized xyxy (needed for obj negative term) -------
        cx = (sx + gx) * inv_gw
        cy = (sy + gy) * inv_gh
        bw = jnp.exp(jnp.minimum(pw, 30.0)) * (aw * (1.0 / (ds * gw)))   # clamp: no inf/NaN
        bh = jnp.exp(jnp.minimum(ph, 30.0)) * (ah * (1.0 / (ds * gh)))
        x1 = cx - 0.5 * bw
        y1 = cy - 0.5 * bh
        x2 = cx + 0.5 * bw
        y2 = cy + 0.5 * bh
        area_p = bw * bh

        # --- ignore mask vs. gt boxes, division-free:
        #     iou <= thr  <=>  inter*(1+thr) <= thr*(area_p + area_g + eps)
        def gt_body(g, keep):
            gx1 = gbox_ref[b, 4 * g + 0]
            gy1 = gbox_ref[b, 4 * g + 1]
            gx2 = gbox_ref[b, 4 * g + 2]
            gy2 = gbox_ref[b, 4 * g + 3]
            ga = (gx2 - gx1) * (gy2 - gy1)
            iw = jnp.maximum(jnp.minimum(x2, gx2) - jnp.maximum(x1, gx1), 0.0)
            ih = jnp.maximum(jnp.minimum(y2, gy2) - jnp.maximum(y1, gy1), 0.0)
            inter = iw * ih
            ok = (inter * (1.0 + ignore_thresh)
                  <= ignore_thresh * (area_p + ga + 1e-9)).astype(f32)
            return keep * ok

        keep = lax.fori_loop(0, n_gt, gt_body, jnp.ones((r_blk, 128), f32),
                             unroll=max(1, n_gt if n_gt <= 16 else 8))

        # --- obj loss ------------------------------------------------------------------------
        obj_mask = (tobj > 0.0).astype(f32)
        l_obj = _softplus(pobj) - pobj * obj_mask        # BCE-with-logits(pobj, obj_mask)
        out_ref[2] += l_obj * (tobj + (1.0 - obj_mask) * keep * valid)

    return kernel


def _yolov3_level_loss(p, t, gt_bbox, anchor, downsample, num_classes,
                       ignore_thresh=0.7, scale_x_y=1.0, label_smooth=False):
    """Per-level loss. Returns per-image sums (B, 4) = [xy, wh, obj, cls]."""
    b, c, h, w = p.shape
    na = anchor.shape[0]
    nc5 = 5 + num_classes
    nc6 = 6 + num_classes
    assert c == na * nc5
    assert t.shape == (b, na, nc6, h, w)
    hw = h * w

    # (rows, 128) tiling of the per-anchor location axis; up to 32 sublanes per tile.
    R = pl.cdiv(hw, 128)
    if R <= 32:
        r_blk = R
    else:
        r_blk = 32
        R = ((R + 31) // 32) * 32
    n_r = R // r_blk
    hw_pad = R * 128

    # Free reshapes, producer dtype preserved (no extra f32 HBM copy); tail zero-padded.
    p_r = p.reshape(b, na, nc5, hw)
    t_r = t.reshape(b, na, nc6, hw)
    if hw_pad != hw:
        pad = hw_pad - hw
        p_r = jnp.pad(p_r, ((0, 0), (0, 0), (0, 0), (0, pad)))
        t_r = jnp.pad(t_r, ((0, 0), (0, 0), (0, 0), (0, pad)))
    p_r = p_r.reshape(b, na, nc5, R, 128)
    t_r = t_r.reshape(b, na, nc6, R, 128)

    # Split location tiles so both v7x TensorCores stay busy when B is small.
    n_ro = 2 if (b < 2 and n_r % 2 == 0) else 1
    n_ri = n_r // n_ro

    # gt boxes cxcywh -> xyxy, flattened to scalars for SMEM.
    gxy1 = gt_bbox[:, :, 0:2] - gt_bbox[:, :, 2:4] * 0.5
    gxy2 = gt_bbox[:, :, 0:2] + gt_bbox[:, :, 2:4] * 0.5
    gbox = jnp.concatenate([gxy1, gxy2], axis=-1).astype(jnp.float32)  # (B, n_gt, 4)
    n_gt = gbox.shape[1]
    gbox_flat = gbox.reshape(b, n_gt * 4)
    anchor_s = jnp.asarray(anchor, jnp.float32)                        # (na, 2)

    kernel = _make_level_kernel(
        h=h, w=w, num_classes=num_classes, n_gt=n_gt, r_blk=r_blk, n_ri=n_ri,
        downsample=downsample, ignore_thresh=ignore_thresh, scale=scale_x_y,
        label_smooth=label_smooth)

    n_loc = b * na * hw
    itemsize_p = jnp.dtype(p.dtype).itemsize
    itemsize_t = jnp.dtype(t.dtype).itemsize
    cost = pl.CostEstimate(
        flops=int((40 + 12 * n_gt + 8 * num_classes) * n_loc),
        transcendentals=int((10 + 2 * num_classes) * n_loc),
        bytes_accessed=int(b * na * nc5 * hw_pad * itemsize_p
                           + b * na * nc6 * hw_pad * itemsize_t
                           + b * n_ro * 4 * r_blk * 128 * 4),
    )

    out = pl.pallas_call(
        kernel,
        out_shape=jax.ShapeDtypeStruct((b, n_ro, 4, r_blk, 128), jnp.float32),
        grid=(b, n_ro, na, n_ri),
        in_specs=[
            pl.BlockSpec(memory_space=pltpu.SMEM),                 # anchors (na, 2)
            pl.BlockSpec(memory_space=pltpu.SMEM),                 # gt boxes (B, 4*n_gt)
            pl.BlockSpec((pl.Squeezed(), pl.Squeezed(), nc5, r_blk, 128),
                         lambda bi, ro, ai, ri: (bi, ai, 0, ro * n_ri + ri, 0)),
            pl.BlockSpec((pl.Squeezed(), pl.Squeezed(), nc6, r_blk, 128),
                         lambda bi, ro, ai, ri: (bi, ai, 0, ro * n_ri + ri, 0)),
        ],
        out_specs=pl.BlockSpec((pl.Squeezed(), pl.Squeezed(), 4, r_blk, 128),
                               lambda bi, ro, ai, ri: (bi, ro, 0, 0, 0)),
        compiler_params=pltpu.CompilerParams(
            dimension_semantics=("parallel", "parallel", "arbitrary", "arbitrary"),
            vmem_limit_bytes=32 * 1024 * 1024),
        cost_estimate=cost,
    )(anchor_s, gbox_flat, p_r, t_r)

    # per-image sums [xy, wh, obj, cls]; tiny final reduction left to XLA.
    return jnp.sum(out, axis=(1, 3, 4))


def yolov3_loss_forward(inputs, gt_bbox, gt_targets, anchors,
                        downsample=(32, 16, 8), num_classes=80,
                        ignore_thresh=0.7, scale_x_y=1.0, label_smooth=False):
    """Equivalent of YOLOv3Loss.forward (iou_loss=None, iou_aware_loss=None)."""
    # TODO(synk): iou_loss / iou_aware_loss injected sub-modules (default None) not supported.
    # TODO(synk): distill_pairs side-effect (raw tensor stash) intentionally not replicated.
    names = ("loss_xy", "loss_wh", "loss_obj", "loss_cls")
    yolo_losses = {}
    for p, t, anchor, ds in zip(inputs, gt_targets, anchors, downsample):
        per_img = _yolov3_level_loss(p, t, gt_bbox, anchor, ds, num_classes,
                                     ignore_thresh, scale_x_y, label_smooth)  # (B, 4)
        means = jnp.mean(per_img, axis=0)                                     # mean over batch
        for k, v in zip(names, (means[0], means[1], means[2], means[3])):
            yolo_losses[k] = yolo_losses[k] + v if k in yolo_losses else v
    total = jnp.float32(0.0)
    for v in yolo_losses.values():
        total = total + v
    yolo_losses["total_loss"] = total
    return yolo_losses


if __name__ == "__main__":
    key = jax.random.PRNGKey(0)
    B = 2
    NUM_CLASSES = 4
    NA = 3
    N_GT = 6
    DOWNSAMPLE = (32, 16, 8)
    HW = (4, 8, 16)
    anchors = [
        jnp.array([[116., 90.], [156., 198.], [373., 326.]], jnp.float32),
        jnp.array([[30., 61.], [62., 45.], [59., 119.]], jnp.float32),
        jnp.array([[10., 13.], [16., 30.], [33., 23.]], jnp.float32),
    ]

    keys = jax.random.split(key, 2 * len(HW) + 2)
    inputs, targets = [], []
    ki = 0
    for s in HW:
        p = jax.random.normal(keys[ki], (B, NA * (5 + NUM_CLASSES), s, s), jnp.float32)
        ki += 1
        t = jax.random.uniform(keys[ki], (B, NA, 6 + NUM_CLASSES, s, s), jnp.float32)
        ki += 1
        # make the tobj channel a hard 0/1 mask (like assigned anchors)
        t = t.at[:, :, 5].set((t[:, :, 5] > 0.7).astype(jnp.float32))
        inputs.append(p)
        targets.append(t)

    cxy = jax.random.uniform(keys[ki], (B, N_GT, 2), minval=0.2, maxval=0.8); ki += 1
    wh = jax.random.uniform(keys[ki], (B, N_GT, 2), minval=0.05, maxval=0.3); ki += 1
    gt_bbox = jnp.concatenate([cxy, wh], axis=-1).astype(jnp.float32)  # (B, n_gt, 4) cxcywh

    losses = yolov3_loss_forward(inputs, gt_bbox, targets, anchors,
                                 downsample=DOWNSAMPLE, num_classes=NUM_CLASSES,
                                 ignore_thresh=0.7, scale_x_y=1.0)
    losses = {k: jax.block_until_ready(v) for k, v in losses.items()}
    assert all(jnp.isfinite(v) for v in losses.values())
    print("KERNEL_OK")
</pallas_src>

<mosaic_0001>
module attributes {stable_mosaic.version = 11 : i64} {
  func.func @kernel(%arg0: i32, %arg1: i32, %arg2: i32, %arg3: i32, %arg4: memref<3x2xf32, #tpu.memory_space<smem>>, %arg5: memref<2x24xf32, #tpu.memory_space<smem>>, %arg6: memref<1x1x9x1x128xf32, #tpu.memory_space<vmem>>, %arg7: memref<1x1x10x1x128xf32, #tpu.memory_space<vmem>>, %arg8: memref<1x1x4x1x128xf32, #tpu.memory_space<vmem>>) attributes {dimension_semantics = [#tpu.dimension_semantics<parallel>, #tpu.dimension_semantics<parallel>, #tpu.dimension_semantics<arbitrary>, #tpu.dimension_semantics<arbitrary>], iteration_bounds = array<i64: 2, 1, 3, 1>, scalar_prefetch = 0 : i64, scratch_operands = 0 : i64, tpu.core_type = #tpu.core_type<tc>, window_params = [{transform_indices = @transform_0, window_bounds = array<i64: 3, 2>}, {transform_indices = @transform_1, window_bounds = array<i64: 2, 24>}, {transform_indices = @transform_2, window_bounds = array<i64: 1, 1, 9, 1, 128>}, {transform_indices = @transform_3, window_bounds = array<i64: 1, 1, 10, 1, 128>}, {transform_indices = @transform_4, window_bounds = array<i64: 1, 1, 4, 1, 128>}]} {
    %c0_i32 = arith.constant 0 : i32
    %0 = arith.cmpi eq, %arg2, %c0_i32 : i32
    %c0_i32_0 = arith.constant 0 : i32
    %1 = arith.cmpi eq, %arg3, %c0_i32_0 : i32
    %2 = arith.andi %0, %1 : i1
    %3 = arith.extui %2 : i1 to i32
    %c0_i32_1 = arith.constant 0 : i32
    %4 = arith.cmpi ne, %3, %c0_i32_1 : i32
    scf.if %4 {
      %cst_171 = arith.constant 0.000000e+00 : f32
      %437 = vector.broadcast %cst_171 : f32 to vector<4x1x128xf32>
      %c0_172 = arith.constant 0 : index
      %c0_173 = arith.constant 0 : index
      %c0_174 = arith.constant 0 : index
      %c0_175 = arith.constant 0 : index
      %c0_176 = arith.constant 0 : index
      %438 = vector.load %arg8[%c0_172, %c0_173, %c0_174, %c0_175, %c0_176] : memref<1x1x4x1x128xf32, #tpu.memory_space<vmem>>, vector<1x1x4x1x128xf32>
      %439 = vector.shape_cast %438 : vector<1x1x4x1x128xf32> to vector<4x1x128xf32>
      %440 = vector.shape_cast %437 : vector<4x1x128xf32> to vector<1x1x4x1x128xf32>
      tpu.vector_store %arg8[%c0_172, %c0_173, %c0_174, %c0_175, %c0_176], %440 {strides = array<i32>} : memref<1x1x4x1x128xf32, #tpu.memory_space<vmem>>, vector<1x1x4x1x128xf32>,
    } else {
    }
    %c0 = arith.constant 0 : index
    %c0_2 = arith.constant 0 : index
    %c0_3 = arith.constant 0 : index
    %c0_4 = arith.constant 0 : index
    %c0_5 = arith.constant 0 : index
    %5 = vector.load %arg6[%c0, %c0_2, %c0_3, %c0_4, %c0_5] : memref<1x1x9x1x128xf32, #tpu.memory_space<vmem>>, vector<1x1x1x1x128xf32>
    %6 = vector.shape_cast %5 : vector<1x1x1x1x128xf32> to vector<1x128xf32>
    %c0_6 = arith.constant 0 : index
    %c0_7 = arith.constant 0 : index
    %c1 = arith.constant 1 : index
    %c0_8 = arith.constant 0 : index
    %c0_9 = arith.constant 0 : index
    %7 = vector.load %arg6[%c0_6, %c0_7, %c1, %c0_8, %c0_9] : memref<1x1x9x1x128xf32, #tpu.memory_space<vmem>>, vector<1x1x1x1x128xf32>
    %8 = vector.shape_cast %7 : vector<1x1x1x1x128xf32> to vector<1x128xf32>
    %c0_10 = arith.constant 0 : index
    %c0_11 = arith.constant 0 : index
    %c2 = arith.constant 2 : index
    %c0_12 = arith.constant 0 : index
    %c0_13 = arith.constant 0 : index
    %9 = vector.load %arg6[%c0_10, %c0_11, %c2, %c0_12, %c0_13] : memref<1x1x9x1x128xf32, #tpu.memory_space<vmem>>, vector<1x1x1x1x128xf32>
    %10 = vector.shape_cast %9 : vector<1x1x1x1x128xf32> to vector<1x128xf32>
    %c0_14 = arith.constant 0 : index
    %c0_15 = arith.constant 0 : index
    %c3 = arith.constant 3 : index
    %c0_16 = arith.constant 0 : index
    %c0_17 = arith.constant 0 : index
    %11 = vector.load %arg6[%c0_14, %c0_15, %c3, %c0_16, %c0_17] : memref<1x1x9x1x128xf32, #tpu.memory_space<vmem>>, vector<1x1x1x1x128xf32>
    %12 = vector.shape_cast %11 : vector<1x1x1x1x128xf32> to vector<1x128xf32>
    %c0_18 = arith.constant 0 : index
    %c0_19 = arith.constant 0 : index
    %c4 = arith.constant 4 : index
    %c0_20 = arith.constant 0 : index
    %c0_21 = arith.constant 0 : index
    %13 = vector.load %arg6[%c0_18, %c0_19, %c4, %c0_20, %c0_21] : memref<1x1x9x1x128xf32, #tpu.memory_space<vmem>>, vector<1x1x1x1x128xf32>
    %14 = vector.shape_cast %13 : vector<1x1x1x1x128xf32> to vector<1x128xf32>
    %c0_22 = arith.constant 0 : index
    %c0_23 = arith.constant 0 : index
    %c0_24 = arith.constant 0 : index
    %c0_25 = arith.constant 0 : index
    %c0_26 = arith.constant 0 : index
    %15 = vector.load %arg7[%c0_22, %c0_23, %c0_24, %c0_25, %c0_26] : memref<1x1x10x1x128xf32, #tpu.memory_space<vmem>>, vector<1x1x1x1x128xf32>
    %16 = vector.shape_cast %15 : vector<1x1x1x1x128xf32> to vector<1x128xf32>
    %c0_27 = arith.constant 0 : index
    %c0_28 = arith.constant 0 : index
    %c1_29 = arith.constant 1 : index
    %c0_30 = arith.constant 0 : index
    %c0_31 = arith.constant 0 : index
    %17 = vector.load %arg7[%c0_27, %c0_28, %c1_29, %c0_30, %c0_31] : memref<1x1x10x1x128xf32, #tpu.memory_space<vmem>>, vector<1x1x1x1x128xf32>
    %18 = vector.shape_cast %17 : vector<1x1x1x1x128xf32> to vector<1x128xf32>
    %c0_32 = arith.constant 0 : index
    %c0_33 = arith.constant 0 : index
    %c2_34 = arith.constant 2 : index
    %c0_35 = arith.constant 0 : index
    %c0_36 = arith.constant 0 : index
    %19 = vector.load %arg7[%c0_32, %c0_33, %c2_34, %c0_35, %c0_36] : memref<1x1x10x1x128xf32, #tpu.memory_space<vmem>>, vector<1x1x1x1x128xf32>
    %20 = vector.shape_cast %19 : vector<1x1x1x1x128xf32> to vector<1x128xf32>
    %c0_37 = arith.constant 0 : index
    %c0_38 = arith.constant 0 : index
    %c3_39 = arith.constant 3 : index
    %c0_40 = arith.constant 0 : index
    %c0_41 = arith.constant 0 : index
    %21 = vector.load %arg7[%c0_37, %c0_38, %c3_39, %c0_40, %c0_41] : memref<1x1x10x1x128xf32, #tpu.memory_space<vmem>>, vector<1x1x1x1x128xf32>
    %22 = vector.shape_cast %21 : vector<1x1x1x1x128xf32> to vector<1x128xf32>
    %c0_42 = arith.constant 0 : index
    %c0_43 = arith.constant 0 : index
    %c4_44 = arith.constant 4 : index
    %c0_45 = arith.constant 0 : index
    %c0_46 = arith.constant 0 : index
    %23 = vector.load %arg7[%c0_42, %c0_43, %c4_44, %c0_45, %c0_46] : memref<1x1x10x1x128xf32, #tpu.memory_space<vmem>>, vector<1x1x1x1x128xf32>
    %24 = vector.shape_cast %23 : vector<1x1x1x1x128xf32> to vector<1x128xf32>
    %c0_47 = arith.constant 0 : index
    %c0_48 = arith.constant 0 : index
    %c5 = arith.constant 5 : index
    %c0_49 = arith.constant 0 : index
    %c0_50 = arith.constant 0 : index
    %25 = vector.load %arg7[%c0_47, %c0_48, %c5, %c0_49, %c0_50] : memref<1x1x10x1x128xf32, #tpu.memory_space<vmem>>, vector<1x1x1x1x128xf32>
    %26 = vector.shape_cast %25 : vector<1x1x1x1x128xf32> to vector<1x128xf32>
    %27 = arith.index_cast %arg2 : i32 to index
    %c0_51 = arith.constant 0 : index
    %28 = memref.load %arg4[%27, %c0_51] : memref<3x2xf32, #tpu.memory_space<smem>>
    %29 = arith.index_cast %arg2 : i32 to index
    %c1_52 = arith.constant 1 : index
    %30 = memref.load %arg4[%29, %c1_52] : memref<3x2xf32, #tpu.memory_space<smem>>
    %31 = tpu.iota {dimensions = array<i32: 0>} : vector<1x128xi32>
    %32 = tpu.iota {dimensions = array<i32: 1>} : vector<1x128xi32>
    %c1_i32 = arith.constant 1 : i32
    %33 = arith.muli %arg1, %c1_i32 : i32
    %34 = arith.addi %33, %arg3 : i32
    %c128_i32 = arith.constant 128 : i32
    %35 = arith.muli %34, %c128_i32 : i32
    %c128_i32_53 = arith.constant 128 : i32
    %36 = vector.broadcast %c128_i32_53 : i32 to vector<1x128xi32>
    %37 = arith.muli %31, %36 : vector<1x128xi32>
    %38 = vector.broadcast %35 : i32 to vector<1x128xi32>
    %39 = arith.addi %38, %37 : vector<1x128xi32>
    %40 = arith.addi %39, %32 : vector<1x128xi32>
    %41 = arith.sitofp %40 : vector<1x128xi32> to vector<1x128xf32>
    %cst = arith.constant 1.600000e+01 : f32
    %42 = vector.broadcast %cst : f32 to vector<1x128xf32>
    %43 = arith.cmpf olt, %41, %42 : vector<1x128xf32>
    %44 = arith.extui %43 : vector<1x128xi1> to vector<1x128xi32>
    %45 = arith.sitofp %44 : vector<1x128xi32> to vector<1x128xf32>
    %cst_54 = arith.constant 5.000000e-01 : f32
    %46 = vector.broadcast %cst_54 : f32 to vector<1x128xf32>
    %47 = arith.addf %41, %46 : vector<1x128xf32>
    %cst_55 = arith.constant 2.500000e-01 : f32
    %48 = vector.broadcast %cst_55 : f32 to vector<1x128xf32>
    %49 = arith.mulf %47, %48 : vector<1x128xf32>
    %50 = math.floor %49 : vector<1x128xf32>
    %cst_56 = arith.constant 4.000000e+00 : f32
    %51 = vector.broadcast %cst_56 : f32 to vector<1x128xf32>
    %52 = arith.mulf %50, %51 : vector<1x128xf32>
    %53 = arith.subf %41, %52 : vector<1x128xf32>
    %54 = arith.negf %6 : vector<1x128xf32>
    %55 = math.exp %54 : vector<1x128xf32>
    %cst_57 = arith.constant 1.000000e+00 : f32
    %56 = vector.broadcast %cst_57 : f32 to vector<1x128xf32>
    %57 = arith.addf %56, %55 : vector<1x128xf32>
    %58 = arith.divf %56, %57 : vector<1x128xf32>
    %cst_58 = arith.constant 1.000000e+00 : f32
    %59 = vector.broadcast %cst_58 : f32 to vector<1x128xf32>
    %60 = arith.mulf %59, %58 : vector<1x128xf32>
    %cst_59 = arith.constant 0.000000e+00 : f32
    %61 = vector.broadcast %cst_59 : f32 to vector<1x128xf32>
    %62 = arith.subf %60, %61 : vector<1x128xf32>
    %63 = arith.negf %8 : vector<1x128xf32>
    %64 = math.exp %63 : vector<1x128xf32>
    %cst_60 = arith.constant 1.000000e+00 : f32
    %65 = vector.broadcast %cst_60 : f32 to vector<1x128xf32>
    %66 = arith.addf %65, %64 : vector<1x128xf32>
    %67 = arith.divf %65, %66 : vector<1x128xf32>
    %cst_61 = arith.constant 1.000000e+00 : f32
    %68 = vector.broadcast %cst_61 : f32 to vector<1x128xf32>
    %69 = arith.mulf %68, %67 : vector<1x128xf32>
    %cst_62 = arith.constant 0.000000e+00 : f32
    %70 = vector.broadcast %cst_62 : f32 to vector<1x128xf32>
    %71 = arith.subf %69, %70 : vector<1x128xf32>
    %72 = vector.shape_cast %26 : vector<1x128xf32> to vector<1x1x128xf32>
    %cst_63 = arith.constant dense<0xFF800000> : vector<1xf32>
    %73 = vector.multi_reduction <maximumf>, %72, %cst_63 [1, 2] : vector<1x1x128xf32> to vector<1xf32>
    %74 = vector.shape_cast %73 : vector<1xf32> to vector<1x1x1xf32>
    %75 = vector.extract %74[0, 0, 0] : f32 from vector<1x1x1xf32>
    %cst_64 = arith.constant 0.000000e+00 : f32
    %76 = arith.cmpf ogt, %75, %cst_64 : f32
    %77 = arith.extui %76 : i1 to i32
    %c0_i32_65 = arith.constant 0 : i32
    %78 = arith.cmpi ne, %77, %c0_i32_65 : i32
    scf.if %78 {
      %437 = arith.mulf %24, %26 : vector<1x128xf32>
      %cst_171 = arith.constant 0.000000e+00 : f32
      %438 = vector.broadcast %cst_171 : f32 to vector<1x128xf32>
      %439 = arith.maximumf %6, %438 : vector<1x128xf32>
      %440 = math.absf %6 : vector<1x128xf32>
      %cst_172 = arith.constant 0.000000e+00 : f32
      %441 = vector.broadcast %cst_172 : f32 to vector<1x128xf32>
      %442 = arith.subf %441, %440 : vector<1x128xf32>
      %443 = math.exp %442 : vector<1x128xf32>
      %444 = math.log1p %443 : vector<1x128xf32>
      %445 = arith.addf %439, %444 : vector<1x128xf32>
      %446 = arith.mulf %6, %16 : vector<1x128xf32>
      %447 = arith.subf %445, %446 : vector<1x128xf32>
      %cst_173 = arith.constant 0.000000e+00 : f32
      %448 = vector.broadcast %cst_173 : f32 to vector<1x128xf32>
      %449 = arith.maximumf %8, %448 : vector<1x128xf32>
      %450 = math.absf %8 : vector<1x128xf32>
      %cst_174 = arith.constant 0.000000e+00 : f32
      %451 = vector.broadcast %cst_174 : f32 to vector<1x128xf32>
      %452 = arith.subf %451, %450 : vector<1x128xf32>
      %453 = math.exp %452 : vector<1x128xf32>
      %454 = math.log1p %453 : vector<1x128xf32>
      %455 = arith.addf %449, %454 : vector<1x128xf32>
      %456 = arith.mulf %8, %18 : vector<1x128xf32>
      %457 = arith.subf %455, %456 : vector<1x128xf32>
      %c0_175 = arith.constant 0 : index
      %c0_176 = arith.constant 0 : index
      %c0_177 = arith.constant 0 : index
      %c0_178 = arith.constant 0 : index
      %c0_179 = arith.constant 0 : index
      %458 = vector.load %arg8[%c0_175, %c0_176, %c0_177, %c0_178, %c0_179] : memref<1x1x4x1x128xf32, #tpu.memory_space<vmem>>, vector<1x1x1x1x128xf32>
      %459 = vector.shape_cast %458 : vector<1x1x1x1x128xf32> to vector<1x128xf32>
      %460 = arith.addf %447, %457 : vector<1x128xf32>
      %461 = arith.mulf %437, %460 : vector<1x128xf32>
      %462 = arith.addf %459, %461 : vector<1x128xf32>
      %c0_180 = arith.constant 0 : index
      %c0_181 = arith.constant 0 : index
      %c0_182 = arith.constant 0 : index
      %c0_183 = arith.constant 0 : index
      %c0_184 = arith.constant 0 : index
      %463 = vector.load %arg8[%c0_180, %c0_181, %c0_182, %c0_183, %c0_184] : memref<1x1x4x1x128xf32, #tpu.memory_space<vmem>>, vector<1x1x1x1x128xf32>
      %464 = vector.shape_cast %463 : vector<1x1x1x1x128xf32> to vector<1x128xf32>
      %465 = vector.shape_cast %462 : vector<1x128xf32> to vector<1x1x1x1x128xf32>
      tpu.vector_store %arg8[%c0_180, %c0_181, %c0_182, %c0_183, %c0_184], %465 {strides = array<i32>} : memref<1x1x4x1x128xf32, #tpu.memory_space<vmem>>, vector<1x1x1x1x128xf32>,
      %c0_185 = arith.constant 0 : index
      %c0_186 = arith.constant 0 : index
      %c1_187 = arith.constant 1 : index
      %c0_188 = arith.constant 0 : index
      %c0_189 = arith.constant 0 : index
      %466 = vector.load %arg8[%c0_185, %c0_186, %c1_187, %c0_188, %c0_189] : memref<1x1x4x1x128xf32, #tpu.memory_space<vmem>>, vector<1x1x1x1x128xf32>
      %467 = vector.shape_cast %466 : vector<1x1x1x1x128xf32> to vector<1x128xf32>
      %468 = arith.subf %10, %20 : vector<1x128xf32>
      %469 = math.absf %468 : vector<1x128xf32>
      %470 = arith.subf %12, %22 : vector<1x128xf32>
      %471 = math.absf %470 : vector<1x128xf32>
      %472 = arith.addf %469, %471 : vector<1x128xf32>
      %473 = arith.mulf %437, %472 : vector<1x128xf32>
      %474 = arith.addf %467, %473 : vector<1x128xf32>
      %c0_190 = arith.constant 0 : index
      %c0_191 = arith.constant 0 : index
      %c1_192 = arith.constant 1 : index
      %c0_193 = arith.constant 0 : index
      %c0_194 = arith.constant 0 : index
      %475 = vector.load %arg8[%c0_190, %c0_191, %c1_192, %c0_193, %c0_194] : memref<1x1x4x1x128xf32, #tpu.memory_space<vmem>>, vector<1x1x1x1x128xf32>
      %476 = vector.shape_cast %475 : vector<1x1x1x1x128xf32> to vector<1x128xf32>
      %477 = vector.shape_cast %474 : vector<1x128xf32> to vector<1x1x1x1x128xf32>
      tpu.vector_store %arg8[%c0_190, %c0_191, %c1_192, %c0_193, %c0_194], %477 {strides = array<i32>} : memref<1x1x4x1x128xf32, #tpu.memory_space<vmem>>, vector<1x1x1x1x128xf32>,
      %cst_195 = arith.constant 0.000000e+00 : f32
      %478 = vector.broadcast %cst_195 : f32 to vector<1x128xf32>
      %c0_i32_196 = arith.constant 0 : i32
      %c5_i32_197 = arith.constant 5 : i32
      %479 = arith.addi %c5_i32_197, %c0_i32_196 : i32
      %c0_198 = arith.constant 0 : index
      %c0_199 = arith.constant 0 : index
      %480 = arith.index_cast %479 : i32 to index
      %c0_200 = arith.constant 0 : index
      %c0_201 = arith.constant 0 : index
      %481 = vector.load %arg6[%c0_198, %c0_199, %480, %c0_200, %c0_201] : memref<1x1x9x1x128xf32, #tpu.memory_space<vmem>>, vector<1x1x1x1x128xf32>
      %482 = vector.shape_cast %481 : vector<1x1x1x1x128xf32> to vector<1x128xf32>
      %c6_i32_202 = arith.constant 6 : i32
      %483 = arith.addi %c6_i32_202, %c0_i32_196 : i32
      %c0_203 = arith.constant 0 : index
      %c0_204 = arith.constant 0 : index
      %484 = arith.index_cast %483 : i32 to index
      %c0_205 = arith.constant 0 : index
      %c0_206 = arith.constant 0 : index
      %485 = vector.load %arg7[%c0_203, %c0_204, %484, %c0_205, %c0_206] : memref<1x1x10x1x128xf32, #tpu.memory_space<vmem>>, vector<1x1x1x1x128xf32>
      %486 = vector.shape_cast %485 : vector<1x1x1x1x128xf32> to vector<1x128xf32>
      %cst_207 = arith.constant 0.000000e+00 : f32
      %487 = vector.broadcast %cst_207 : f32 to vector<1x128xf32>
      %488 = arith.maximumf %482, %487 : vector<1x128xf32>
      %489 = math.absf %482 : vector<1x128xf32>
      %cst_208 = arith.constant 0.000000e+00 : f32
      %490 = vector.broadcast %cst_208 : f32 to vector<1x128xf32>
      %491 = arith.subf %490, %489 : vector<1x128xf32>
      %492 = math.exp %491 : vector<1x128xf32>
      %493 = math.log1p %492 : vector<1x128xf32>
      %494 = arith.addf %488, %493 : vector<1x128xf32>
      %495 = arith.mulf %482, %486 : vector<1x128xf32>
      %496 = arith.subf %494, %495 : vector<1x128xf32>
      %497 = arith.addf %478, %496 : vector<1x128xf32>
      %c1_i32_209 = arith.constant 1 : i32
      %c5_i32_210 = arith.constant 5 : i32
      %498 = arith.addi %c5_i32_210, %c1_i32_209 : i32
      %c0_211 = arith.constant 0 : index
      %c0_212 = arith.constant 0 : index
      %499 = arith.index_cast %498 : i32 to index
      %c0_213 = arith.constant 0 : index
      %c0_214 = arith.constant 0 : index
      %500 = vector.load %arg6[%c0_211, %c0_212, %499, %c0_213, %c0_214] : memref<1x1x9x1x128xf32, #tpu.memory_space<vmem>>, vector<1x1x1x1x128xf32>
      %501 = vector.shape_cast %500 : vector<1x1x1x1x128xf32> to vector<1x128xf32>
      %c6_i32_215 = arith.constant 6 : i32
      %502 = arith.addi %c6_i32_215, %c1_i32_209 : i32
      %c0_216 = arith.constant 0 : index
      %c0_217 = arith.constant 0 : index
      %503 = arith.index_cast %502 : i32 to index
      %c0_218 = arith.constant 0 : index
      %c0_219 = arith.constant 0 : index
      %504 = vector.load %arg7[%c0_216, %c0_217, %503, %c0_218, %c0_219] : memref<1x1x10x1x128xf32, #tpu.memory_space<vmem>>, vector<1x1x1x1x128xf32>
      %505 = vector.shape_cast %504 : vector<1x1x1x1x128xf32> to vector<1x128xf32>
      %cst_220 = arith.constant 0.000000e+00 : f32
      %506 = vector.broadcast %cst_220 : f32 to vector<1x128xf32>
      %507 = arith.maximumf %501, %506 : vector<1x128xf32>
      %508 = math.absf %501 : vector<1x128xf32>
      %cst_221 = arith.constant 0.000000e+00 : f32
      %509 = vector.broadcast %cst_221 : f32 to vector<1x128xf32>
      %510 = arith.subf %509, %508 : vector<1x128xf32>
      %511 = math.exp %510 : vector<1x128xf32>
      %512 = math.log1p %511 : vector<1x128xf32>
      %513 = arith.addf %507, %512 : vector<1x128xf32>
      %514 = arith.mulf %501, %505 : vector<1x128xf32>
      %515 = arith.subf %513, %514 : vector<1x128xf32>
      %516 = arith.addf %497, %515 : vector<1x128xf32>
      %c2_i32_222 = arith.constant 2 : i32
      %c5_i32_223 = arith.constant 5 : i32
      %517 = arith.addi %c5_i32_223, %c2_i32_222 : i32
      %c0_224 = arith.constant 0 : index
      %c0_225 = arith.constant 0 : index
      %518 = arith.index_cast %517 : i32 to index
      %c0_226 = arith.constant 0 : index
      %c0_227 = arith.constant 0 : index
      %519 = vector.load %arg6[%c0_224, %c0_225, %518, %c0_226, %c0_227] : memref<1x1x9x1x128xf32, #tpu.memory_space<vmem>>, vector<1x1x1x1x128xf32>
      %520 = vector.shape_cast %519 : vector<1x1x1x1x128xf32> to vector<1x128xf32>
      %c6_i32_228 = arith.constant 6 : i32
      %521 = arith.addi %c6_i32_228, %c2_i32_222 : i32
      %c0_229 = arith.constant 0 : index
      %c0_230 = arith.constant 0 : index
      %522 = arith.index_cast %521 : i32 to index
      %c0_231 = arith.constant 0 : index
      %c0_232 = arith.constant 0 : index
      %523 = vector.load %arg7[%c0_229, %c0_230, %522, %c0_231, %c0_232] : memref<1x1x10x1x128xf32, #tpu.memory_space<vmem>>, vector<1x1x1x1x128xf32>
      %524 = vector.shape_cast %523 : vector<1x1x1x1x128xf32> to vector<1x128xf32>
      %cst_233 = arith.constant 0.000000e+00 : f32
      %525 = vector.broadcast %cst_233 : f32 to vector<1x128xf32>
      %526 = arith.maximumf %520, %525 : vector<1x128xf32>
      %527 = math.absf %520 : vector<1x128xf32>
      %cst_234 = arith.constant 0.000000e+00 : f32
      %528 = vector.broadcast %cst_234 : f32 to vector<1x128xf32>
      %529 = arith.subf %528, %527 : vector<1x128xf32>
      %530 = math.exp %529 : vector<1x128xf32>
      %531 = math.log1p %530 : vector<1x128xf32>
      %532 = arith.addf %526, %531 : vector<1x128xf32>
      %533 = arith.mulf %520, %524 : vector<1x128xf32>
      %534 = arith.subf %532, %533 : vector<1x128xf32>
      %535 = arith.addf %516, %534 : vector<1x128xf32>
      %c3_i32_235 = arith.constant 3 : i32
      %c5_i32_236 = arith.constant 5 : i32
      %536 = arith.addi %c5_i32_236, %c3_i32_235 : i32
      %c0_237 = arith.constant 0 : index
      %c0_238 = arith.constant 0 : index
      %537 = arith.index_cast %536 : i32 to index
      %c0_239 = arith.constant 0 : index
      %c0_240 = arith.constant 0 : index
      %538 = vector.load %arg6[%c0_237, %c0_238, %537, %c0_239, %c0_240] : memref<1x1x9x1x128xf32, #tpu.memory_space<vmem>>, vector<1x1x1x1x128xf32>
      %539 = vector.shape_cast %538 : vector<1x1x1x1x128xf32> to vector<1x128xf32>
      %c6_i32_241 = arith.constant 6 : i32
      %540 = arith.addi %c6_i32_241, %c3_i32_235 : i32
      %c0_242 = arith.constant 0 : index
      %c0_243 = arith.constant 0 : index
      %541 = arith.index_cast %540 : i32 to index
      %c0_244 = arith.constant 0 : index
      %c0_245 = arith.constant 0 : index
      %542 = vector.load %arg7[%c0_242, %c0_243, %541, %c0_244, %c0_245] : memref<1x1x10x1x128xf32, #tpu.memory_space<vmem>>, vector<1x1x1x1x128xf32>
      %543 = vector.shape_cast %542 : vector<1x1x1x1x128xf32> to vector<1x128xf32>
      %cst_246 = arith.constant 0.000000e+00 : f32
      %544 = vector.broadcast %cst_246 : f32 to vector<1x128xf32>
      %545 = arith.maximumf %539, %544 : vector<1x128xf32>
      %546 = math.absf %539 : vector<1x128xf32>
      %cst_247 = arith.constant 0.000000e+00 : f32
      %547 = vector.broadcast %cst_247 : f32 to vector<1x128xf32>
      %548 = arith.subf %547, %546 : vector<1x128xf32>
      %549 = math.exp %548 : vector<1x128xf32>
      %550 = math.log1p %549 : vector<1x128xf32>
      %551 = arith.addf %545, %550 : vector<1x128xf32>
      %552 = arith.mulf %539, %543 : vector<1x128xf32>
      %553 = arith.subf %551, %552 : vector<1x128xf32>
      %554 = arith.addf %535, %553 : vector<1x128xf32>
      %c4_i32_248 = arith.constant 4 : i32
      %c0_249 = arith.constant 0 : index
      %c0_250 = arith.constant 0 : index
      %c3_251 = arith.constant 3 : index
      %c0_252 = arith.constant 0 : index
      %c0_253 = arith.constant 0 : index
      %555 = vector.load %arg8[%c0_249, %c0_250, %c3_251, %c0_252, %c0_253] : memref<1x1x4x1x128xf32, #tpu.memory_space<vmem>>, vector<1x1x1x1x128xf32>
      %556 = vector.shape_cast %555 : vector<1x1x1x1x128xf32> to vector<1x128xf32>
      %557 = arith.mulf %554, %26 : vector<1x128xf32>
      %558 = arith.addf %556, %557 : vector<1x128xf32>
      %c0_254 = arith.constant 0 : index
      %c0_255 = arith.constant 0 : index
      %c3_256 = arith.constant 3 : index
      %c0_257 = arith.constant 0 : index
      %c0_258 = arith.constant 0 : index
      %559 = vector.load %arg8[%c0_254, %c0_255, %c3_256, %c0_257, %c0_258] : memref<1x1x4x1x128xf32, #tpu.memory_space<vmem>>, vector<1x1x1x1x128xf32>
      %560 = vector.shape_cast %559 : vector<1x1x1x1x128xf32> to vector<1x128xf32>
      %561 = vector.shape_cast %558 : vector<1x128xf32> to vector<1x1x1x1x128xf32>
      tpu.vector_store %arg8[%c0_254, %c0_255, %c3_256, %c0_257, %c0_258], %561 {strides = array<i32>} : memref<1x1x4x1x128xf32, #tpu.memory_space<vmem>>, vector<1x1x1x1x128xf32>,
    } else {
    }
    %79 = arith.addf %62, %53 : vector<1x128xf32>
    %cst_66 = arith.constant 2.500000e-01 : f32
    %80 = vector.broadcast %cst_66 : f32 to vector<1x128xf32>
    %81 = arith.mulf %79, %80 : vector<1x128xf32>
    %82 = arith.addf %71, %50 : vector<1x128xf32>
    %cst_67 = arith.constant 2.500000e-01 : f32
    %83 = vector.broadcast %cst_67 : f32 to vector<1x128xf32>
    %84 = arith.mulf %82, %83 : vector<1x128xf32>
    %cst_68 = arith.constant 3.000000e+01 : f32
    %85 = vector.broadcast %cst_68 : f32 to vector<1x128xf32>
    %86 = arith.minimumf %10, %85 : vector<1x128xf32>
    %87 = math.exp %86 : vector<1x128xf32>
    %cst_69 = arith.constant 7.812500e-03 : f32
    %88 = arith.mulf %28, %cst_69 : f32
    %89 = vector.broadcast %88 : f32 to vector<1x128xf32>
    %90 = arith.mulf %87, %89 : vector<1x128xf32>
    %cst_70 = arith.constant 3.000000e+01 : f32
    %91 = vector.broadcast %cst_70 : f32 to vector<1x128xf32>
    %92 = arith.minimumf %12, %91 : vector<1x128xf32>
    %93 = math.exp %92 : vector<1x128xf32>
    %cst_71 = arith.constant 7.812500e-03 : f32
    %94 = arith.mulf %30, %cst_71 : f32
    %95 = vector.broadcast %94 : f32 to vector<1x128xf32>
    %96 = arith.mulf %93, %95 : vector<1x128xf32>
    %cst_72 = arith.constant 5.000000e-01 : f32
    %97 = vector.broadcast %cst_72 : f32 to vector<1x128xf32>
    %98 = arith.mulf %97, %90 : vector<1x128xf32>
    %99 = arith.subf %81, %98 : vector<1x128xf32>
    %cst_73 = arith.constant 5.000000e-01 : f32
    %100 = vector.broadcast %cst_73 : f32 to vector<1x128xf32>
    %101 = arith.mulf %100, %96 : vector<1x128xf32>
    %102 = arith.subf %84, %101 : vector<1x128xf32>
    %cst_74 = arith.constant 5.000000e-01 : f32
    %103 = vector.broadcast %cst_74 : f32 to vector<1x128xf32>
    %104 = arith.mulf %103, %90 : vector<1x128xf32>
    %105 = arith.addf %81, %104 : vector<1x128xf32>
    %cst_75 = arith.constant 5.000000e-01 : f32
    %106 = vector.broadcast %cst_75 : f32 to vector<1x128xf32>
    %107 = arith.mulf %106, %96 : vector<1x128xf32>
    %108 = arith.addf %84, %107 : vector<1x128xf32>
    %109 = arith.mulf %90, %96 : vector<1x128xf32>
    %cst_76 = arith.constant 1.000000e+00 : f32
    %110 = vector.broadcast %cst_76 : f32 to vector<1x128xf32>
    %c0_i32_77 = arith.constant 0 : i32
    %c4_i32 = arith.constant 4 : i32
    %111 = arith.muli %c4_i32, %c0_i32_77 : i32
    %c0_i32_78 = arith.constant 0 : i32
    %112 = arith.addi %111, %c0_i32_78 : i32
    %113 = arith.index_cast %arg0 : i32 to index
    %114 = arith.index_cast %112 : i32 to index
    %115 = memref.load %arg5[%113, %114] : memref<2x24xf32, #tpu.memory_space<smem>>
    %c4_i32_79 = arith.constant 4 : i32
    %116 = arith.muli %c4_i32_79, %c0_i32_77 : i32
    %c1_i32_80 = arith.constant 1 : i32
    %117 = arith.addi %116, %c1_i32_80 : i32
    %118 = arith.index_cast %arg0 : i32 to index
    %119 = arith.index_cast %117 : i32 to index
    %120 = memref.load %arg5[%118, %119] : memref<2x24xf32, #tpu.memory_space<smem>>
    %c4_i32_81 = arith.constant 4 : i32
    %121 = arith.muli %c4_i32_81, %c0_i32_77 : i32
    %c2_i32 = arith.constant 2 : i32
    %122 = arith.addi %121, %c2_i32 : i32
    %123 = arith.index_cast %arg0 : i32 to index
    %124 = arith.index_cast %122 : i32 to index
    %125 = memref.load %arg5[%123, %124] : memref<2x24xf32, #tpu.memory_space<smem>>
    %c4_i32_82 = arith.constant 4 : i32
    %126 = arith.muli %c4_i32_82, %c0_i32_77 : i32
    %c3_i32 = arith.constant 3 : i32
    %127 = arith.addi %126, %c3_i32 : i32
    %128 = arith.index_cast %arg0 : i32 to index
    %129 = arith.index_cast %127 : i32 to index
    %130 = memref.load %arg5[%128, %129] : memref<2x24xf32, #tpu.memory_space<smem>>
    %131 = arith.subf %125, %115 : f32
    %132 = arith.subf %130, %120 : f32
    %133 = arith.mulf %131, %132 : f32
    %134 = vector.broadcast %125 : f32 to vector<1x128xf32>
    %135 = arith.minimumf %105, %134 : vector<1x128xf32>
    %136 = vector.broadcast %115 : f32 to vector<1x128xf32>
    %137 = arith.maximumf %99, %136 : vector<1x128xf32>
    %138 = arith.subf %135, %137 : vector<1x128xf32>
    %cst_83 = arith.constant 0.000000e+00 : f32
    %139 = vector.broadcast %cst_83 : f32 to vector<1x128xf32>
    %140 = arith.maximumf %138, %139 : vector<1x128xf32>
    %141 = vector.broadcast %130 : f32 to vector<1x128xf32>
    %142 = arith.minimumf %108, %141 : vector<1x128xf32>
    %143 = vector.broadcast %120 : f32 to vector<1x128xf32>
    %144 = arith.maximumf %102, %143 : vector<1x128xf32>
    %145 = arith.subf %142, %144 : vector<1x128xf32>
    %cst_84 = arith.constant 0.000000e+00 : f32
    %146 = vector.broadcast %cst_84 : f32 to vector<1x128xf32>
    %147 = arith.maximumf %145, %146 : vector<1x128xf32>
    %148 = arith.mulf %140, %147 : vector<1x128xf32>
    %cst_85 = arith.constant 1.700000e+00 : f32
    %149 = vector.broadcast %cst_85 : f32 to vector<1x128xf32>
    %150 = arith.mulf %148, %149 : vector<1x128xf32>
    %151 = vector.broadcast %133 : f32 to vector<1x128xf32>
    %152 = arith.addf %109, %151 : vector<1x128xf32>
    %cst_86 = arith.constant 9.99999971E-10 : f32
    %153 = vector.broadcast %cst_86 : f32 to vector<1x128xf32>
    %154 = arith.addf %152, %153 : vector<1x128xf32>
    %cst_87 = arith.constant 0.699999988 : f32
    %155 = vector.broadcast %cst_87 : f32 to vector<1x128xf32>
    %156 = arith.mulf %155, %154 : vector<1x128xf32>
    %157 = arith.cmpf ole, %150, %156 : vector<1x128xf32>
    %158 = arith.extui %157 : vector<1x128xi1> to vector<1x128xi32>
    %159 = arith.sitofp %158 : vector<1x128xi32> to vector<1x128xf32>
    %160 = arith.mulf %110, %159 : vector<1x128xf32>
    %c1_i32_88 = arith.constant 1 : i32
    %c4_i32_89 = arith.constant 4 : i32
    %161 = arith.muli %c4_i32_89, %c1_i32_88 : i32
    %c0_i32_90 = arith.constant 0 : i32
    %162 = arith.addi %161, %c0_i32_90 : i32
    %163 = arith.index_cast %arg0 : i32 to index
    %164 = arith.index_cast %162 : i32 to index
    %165 = memref.load %arg5[%163, %164] : memref<2x24xf32, #tpu.memory_space<smem>>
    %c4_i32_91 = arith.constant 4 : i32
    %166 = arith.muli %c4_i32_91, %c1_i32_88 : i32
    %c1_i32_92 = arith.constant 1 : i32
    %167 = arith.addi %166, %c1_i32_92 : i32
    %168 = arith.index_cast %arg0 : i32 to index
    %169 = arith.index_cast %167 : i32 to index
    %170 = memref.load %arg5[%168, %169] : memref<2x24xf32, #tpu.memory_space<smem>>
    %c4_i32_93 = arith.constant 4 : i32
    %171 = arith.muli %c4_i32_93, %c1_i32_88 : i32
    %c2_i32_94 = arith.constant 2 : i32
    %172 = arith.addi %171, %c2_i32_94 : i32
    %173 = arith.index_cast %arg0 : i32 to index
    %174 = arith.index_cast %172 : i32 to index
    %175 = memref.load %arg5[%173, %174] : memref<2x24xf32, #tpu.memory_space<smem>>
    %c4_i32_95 = arith.constant 4 : i32
    %176 = arith.muli %c4_i32_95, %c1_i32_88 : i32
    %c3_i32_96 = arith.constant 3 : i32
    %177 = arith.addi %176, %c3_i32_96 : i32
    %178 = arith.index_cast %arg0 : i32 to index
    %179 = arith.index_cast %177 : i32 to index
    %180 = memref.load %arg5[%178, %179] : memref<2x24xf32, #tpu.memory_space<smem>>
    %181 = arith.subf %175, %165 : f32
    %182 = arith.subf %180, %170 : f32
    %183 = arith.mulf %181, %182 : f32
    %184 = vector.broadcast %175 : f32 to vector<1x128xf32>
    %185 = arith.minimumf %105, %184 : vector<1x128xf32>
    %186 = vector.broadcast %165 : f32 to vector<1x128xf32>
    %187 = arith.maximumf %99, %186 : vector<1x128xf32>
    %188 = arith.subf %185, %187 : vector<1x128xf32>
    %cst_97 = arith.constant 0.000000e+00 : f32
    %189 = vector.broadcast %cst_97 : f32 to vector<1x128xf32>
    %190 = arith.maximumf %188, %189 : vector<1x128xf32>
    %191 = vector.broadcast %180 : f32 to vector<1x128xf32>
    %192 = arith.minimumf %108, %191 : vector<1x128xf32>
    %193 = vector.broadcast %170 : f32 to vector<1x128xf32>
    %194 = arith.maximumf %102, %193 : vector<1x128xf32>
    %195 = arith.subf %192, %194 : vector<1x128xf32>
    %cst_98 = arith.constant 0.000000e+00 : f32
    %196 = vector.broadcast %cst_98 : f32 to vector<1x128xf32>
    %197 = arith.maximumf %195, %196 : vector<1x128xf32>
    %198 = arith.mulf %190, %197 : vector<1x128xf32>
    %cst_99 = arith.constant 1.700000e+00 : f32
    %199 = vector.broadcast %cst_99 : f32 to vector<1x128xf32>
    %200 = arith.mulf %198, %199 : vector<1x128xf32>
    %201 = vector.broadcast %183 : f32 to vector<1x128xf32>
    %202 = arith.addf %109, %201 : vector<1x128xf32>
    %cst_100 = arith.constant 9.99999971E-10 : f32
    %203 = vector.broadcast %cst_100 : f32 to vector<1x128xf32>
    %204 = arith.addf %202, %203 : vector<1x128xf32>
    %cst_101 = arith.constant 0.699999988 : f32
    %205 = vector.broadcast %cst_101 : f32 to vector<1x128xf32>
    %206 = arith.mulf %205, %204 : vector<1x128xf32>
    %207 = arith.cmpf ole, %200, %206 : vector<1x128xf32>
    %208 = arith.extui %207 : vector<1x128xi1> to vector<1x128xi32>
    %209 = arith.sitofp %208 : vector<1x128xi32> to vector<1x128xf32>
    %210 = arith.mulf %160, %209 : vector<1x128xf32>
    %c2_i32_102 = arith.constant 2 : i32
    %c4_i32_103 = arith.constant 4 : i32
    %211 = arith.muli %c4_i32_103, %c2_i32_102 : i32
    %c0_i32_104 = arith.constant 0 : i32
    %212 = arith.addi %211, %c0_i32_104 : i32
    %213 = arith.index_cast %arg0 : i32 to index
    %214 = arith.index_cast %212 : i32 to index
    %215 = memref.load %arg5[%213, %214] : memref<2x24xf32, #tpu.memory_space<smem>>
    %c4_i32_105 = arith.constant 4 : i32
    %216 = arith.muli %c4_i32_105, %c2_i32_102 : i32
    %c1_i32_106 = arith.constant 1 : i32
    %217 = arith.addi %216, %c1_i32_106 : i32
    %218 = arith.index_cast %arg0 : i32 to index
    %219 = arith.index_cast %217 : i32 to index
    %220 = memref.load %arg5[%218, %219] : memref<2x24xf32, #tpu.memory_space<smem>>
    %c4_i32_107 = arith.constant 4 : i32
    %221 = arith.muli %c4_i32_107, %c2_i32_102 : i32
    %c2_i32_108 = arith.constant 2 : i32
    %222 = arith.addi %221, %c2_i32_108 : i32
    %223 = arith.index_cast %arg0 : i32 to index
    %224 = arith.index_cast %222 : i32 to index
    %225 = memref.load %arg5[%223, %224] : memref<2x24xf32, #tpu.memory_space<smem>>
    %c4_i32_109 = arith.constant 4 : i32
    %226 = arith.muli %c4_i32_109, %c2_i32_102 : i32
    %c3_i32_110 = arith.constant 3 : i32
    %227 = arith.addi %226, %c3_i32_110 : i32
    %228 = arith.index_cast %arg0 : i32 to index
    %229 = arith.index_cast %227 : i32 to index
    %230 = memref.load %arg5[%228, %229] : memref<2x24xf32, #tpu.memory_space<smem>>
    %231 = arith.subf %225, %215 : f32
    %232 = arith.subf %230, %220 : f32
    %233 = arith.mulf %231, %232 : f32
    %234 = vector.broadcast %225 : f32 to vector<1x128xf32>
    %235 = arith.minimumf %105, %234 : vector<1x128xf32>
    %236 = vector.broadcast %215 : f32 to vector<1x128xf32>
    %237 = arith.maximumf %99, %236 : vector<1x128xf32>
    %238 = arith.subf %235, %237 : vector<1x128xf32>
    %cst_111 = arith.constant 0.000000e+00 : f32
    %239 = vector.broadcast %cst_111 : f32 to vector<1x128xf32>
    %240 = arith.maximumf %238, %239 : vector<1x128xf32>
    %241 = vector.broadcast %230 : f32 to vector<1x128xf32>
    %242 = arith.minimumf %108, %241 : vector<1x128xf32>
    %243 = vector.broadcast %220 : f32 to vector<1x128xf32>
    %244 = arith.maximumf %102, %243 : vector<1x128xf32>
    %245 = arith.subf %242, %244 : vector<1x128xf32>
    %cst_112 = arith.constant 0.000000e+00 : f32
    %246 = vector.broadcast %cst_112 : f32 to vector<1x128xf32>
    %247 = arith.maximumf %245, %246 : vector<1x128xf32>
    %248 = arith.mulf %240, %247 : vector<1x128xf32>
    %cst_113 = arith.constant 1.700000e+00 : f32
    %249 = vector.broadcast %cst_113 : f32 to vector<1x128xf32>
    %250 = arith.mulf %248, %249 : vector<1x128xf32>
    %251 = vector.broadcast %233 : f32 to vector<1x128xf32>
    %252 = arith.addf %109, %251 : vector<1x128xf32>
    %cst_114 = arith.constant 9.99999971E-10 : f32
    %253 = vector.broadcast %cst_114 : f32 to vector<1x128xf32>
    %254 = arith.addf %252, %253 : vector<1x128xf32>
    %cst_115 = arith.constant 0.699999988 : f32
    %255 = vector.broadcast %cst_115 : f32 to vector<1x128xf32>
    %256 = arith.mulf %255, %254 : vector<1x128xf32>
    %257 = arith.cmpf ole, %250, %256 : vector<1x128xf32>
    %258 = arith.extui %257 : vector<1x128xi1> to vector<1x128xi32>
    %259 = arith.sitofp %258 : vector<1x128xi32> to vector<1x128xf32>
    %260 = arith.mulf %210, %259 : vector<1x128xf32>
    %c3_i32_116 = arith.constant 3 : i32
    %c4_i32_117 = arith.constant 4 : i32
    %261 = arith.muli %c4_i32_117, %c3_i32_116 : i32
    %c0_i32_118 = arith.constant 0 : i32
    %262 = arith.addi %261, %c0_i32_118 : i32
    %263 = arith.index_cast %arg0 : i32 to index
    %264 = arith.index_cast %262 : i32 to index
    %265 = memref.load %arg5[%263, %264] : memref<2x24xf32, #tpu.memory_space<smem>>
    %c4_i32_119 = arith.constant 4 : i32
    %266 = arith.muli %c4_i32_119, %c3_i32_116 : i32
    %c1_i32_120 = arith.constant 1 : i32
    %267 = arith.addi %266, %c1_i32_120 : i32
    %268 = arith.index_cast %arg0 : i32 to index
    %269 = arith.index_cast %267 : i32 to index
    %270 = memref.load %arg5[%268, %269] : memref<2x24xf32, #tpu.memory_space<smem>>
    %c4_i32_121 = arith.constant 4 : i32
    %271 = arith.muli %c4_i32_121, %c3_i32_116 : i32
    %c2_i32_122 = arith.constant 2 : i32
    %272 = arith.addi %271, %c2_i32_122 : i32
    %273 = arith.index_cast %arg0 : i32 to index
    %274 = arith.index_cast %272 : i32 to index
    %275 = memref.load %arg5[%273, %274] : memref<2x24xf32, #tpu.memory_space<smem>>
    %c4_i32_123 = arith.constant 4 : i32
    %276 = arith.muli %c4_i32_123, %c3_i32_116 : i32
    %c3_i32_124 = arith.constant 3 : i32
    %277 = arith.addi %276, %c3_i32_124 : i32
    %278 = arith.index_cast %arg0 : i32 to index
    %279 = arith.index_cast %277 : i32 to index
    %280 = memref.load %arg5[%278, %279] : memref<2x24xf32, #tpu.memory_space<smem>>
    %281 = arith.subf %275, %265 : f32
    %282 = arith.subf %280, %270 : f32
    %283 = arith.mulf %281, %282 : f32
    %284 = vector.broadcast %275 : f32 to vector<1x128xf32>
    %285 = arith.minimumf %105, %284 : vector<1x128xf32>
    %286 = vector.broadcast %265 : f32 to vector<1x128xf32>
    %287 = arith.maximumf %99, %286 : vector<1x128xf32>
    %288 = arith.subf %285, %287 : vector<1x128xf32>
    %cst_125 = arith.constant 0.000000e+00 : f32
    %289 = vector.broadcast %cst_125 : f32 to vector<1x128xf32>
    %290 = arith.maximumf %288, %289 : vector<1x128xf32>
    %291 = vector.broadcast %280 : f32 to vector<1x128xf32>
    %292 = arith.minimumf %108, %291 : vector<1x128xf32>
    %293 = vector.broadcast %270 : f32 to vector<1x128xf32>
    %294 = arith.maximumf %102, %293 : vector<1x128xf32>
    %295 = arith.subf %292, %294 : vector<1x128xf32>
    %cst_126 = arith.constant 0.000000e+00 : f32
    %296 = vector.broadcast %cst_126 : f32 to vector<1x128xf32>
    %297 = arith.maximumf %295, %296 : vector<1x128xf32>
    %298 = arith.mulf %290, %297 : vector<1x128xf32>
    %cst_127 = arith.constant 1.700000e+00 : f32
    %299 = vector.broadcast %cst_127 : f32 to vector<1x128xf32>
    %300 = arith.mulf %298, %299 : vector<1x128xf32>
    %301 = vector.broadcast %283 : f32 to vector<1x128xf32>
    %302 = arith.addf %109, %301 : vector<1x128xf32>
    %cst_128 = arith.constant 9.99999971E-10 : f32
    %303 = vector.broadcast %cst_128 : f32 to vector<1x128xf32>
    %304 = arith.addf %302, %303 : vector<1x128xf32>
    %cst_129 = arith.constant 0.699999988 : f32
    %305 = vector.broadcast %cst_129 : f32 to vector<1x128xf32>
    %306 = arith.mulf %305, %304 : vector<1x128xf32>
    %307 = arith.cmpf ole, %300, %306 : vector<1x128xf32>
    %308 = arith.extui %307 : vector<1x128xi1> to vector<1x128xi32>
    %309 = arith.sitofp %308 : vector<1x128xi32> to vector<1x128xf32>
    %310 = arith.mulf %260, %309 : vector<1x128xf32>
    %c4_i32_130 = arith.constant 4 : i32
    %c4_i32_131 = arith.constant 4 : i32
    %311 = arith.muli %c4_i32_131, %c4_i32_130 : i32
    %c0_i32_132 = arith.constant 0 : i32
    %312 = arith.addi %311, %c0_i32_132 : i32
    %313 = arith.index_cast %arg0 : i32 to index
    %314 = arith.index_cast %312 : i32 to index
    %315 = memref.load %arg5[%313, %314] : memref<2x24xf32, #tpu.memory_space<smem>>
    %c4_i32_133 = arith.constant 4 : i32
    %316 = arith.muli %c4_i32_133, %c4_i32_130 : i32
    %c1_i32_134 = arith.constant 1 : i32
    %317 = arith.addi %316, %c1_i32_134 : i32
    %318 = arith.index_cast %arg0 : i32 to index
    %319 = arith.index_cast %317 : i32 to index
    %320 = memref.load %arg5[%318, %319] : memref<2x24xf32, #tpu.memory_space<smem>>
    %c4_i32_135 = arith.constant 4 : i32
    %321 = arith.muli %c4_i32_135, %c4_i32_130 : i32
    %c2_i32_136 = arith.constant 2 : i32
    %322 = arith.addi %321, %c2_i32_136 : i32
    %323 = arith.index_cast %arg0 : i32 to index
    %324 = arith.index_cast %322 : i32 to index
    %325 = memref.load %arg5[%323, %324] : memref<2x24xf32, #tpu.memory_space<smem>>
    %c4_i32_137 = arith.constant 4 : i32
    %326 = arith.muli %c4_i32_137, %c4_i32_130 : i32
    %c3_i32_138 = arith.constant 3 : i32
    %327 = arith.addi %326, %c3_i32_138 : i32
    %328 = arith.index_cast %arg0 : i32 to index
    %329 = arith.index_cast %327 : i32 to index
    %330 = memref.load %arg5[%328, %329] : memref<2x24xf32, #tpu.memory_space<smem>>
    %331 = arith.subf %325, %315 : f32
    %332 = arith.subf %330, %320 : f32
    %333 = arith.mulf %331, %332 : f32
    %334 = vector.broadcast %325 : f32 to vector<1x128xf32>
    %335 = arith.minimumf %105, %334 : vector<1x128xf32>
    %336 = vector.broadcast %315 : f32 to vector<1x128xf32>
    %337 = arith.maximumf %99, %336 : vector<1x128xf32>
    %338 = arith.subf %335, %337 : vector<1x128xf32>
    %cst_139 = arith.constant 0.000000e+00 : f32
    %339 = vector.broadcast %cst_139 : f32 to vector<1x128xf32>
    %340 = arith.maximumf %338, %339 : vector<1x128xf32>
    %341 = vector.broadcast %330 : f32 to vector<1x128xf32>
    %342 = arith.minimumf %108, %341 : vector<1x128xf32>
    %343 = vector.broadcast %320 : f32 to vector<1x128xf32>
    %344 = arith.maximumf %102, %343 : vector<1x128xf32>
    %345 = arith.subf %342, %344 : vector<1x128xf32>
    %cst_140 = arith.constant 0.000000e+00 : f32
    %346 = vector.broadcast %cst_140 : f32 to vector<1x128xf32>
    %347 = arith.maximumf %345, %346 : vector<1x128xf32>
    %348 = arith.mulf %340, %347 : vector<1x128xf32>
    %cst_141 = arith.constant 1.700000e+00 : f32
    %349 = vector.broadcast %cst_141 : f32 to vector<1x128xf32>
    %350 = arith.mulf %348, %349 : vector<1x128xf32>
    %351 = vector.broadcast %333 : f32 to vector<1x128xf32>
    %352 = arith.addf %109, %351 : vector<1x128xf32>
    %cst_142 = arith.constant 9.99999971E-10 : f32
    %353 = vector.broadcast %cst_142 : f32 to vector<1x128xf32>
    %354 = arith.addf %352, %353 : vector<1x128xf32>
    %cst_143 = arith.constant 0.699999988 : f32
    %355 = vector.broadcast %cst_143 : f32 to vector<1x128xf32>
    %356 = arith.mulf %355, %354 : vector<1x128xf32>
    %357 = arith.cmpf ole, %350, %356 : vector<1x128xf32>
    %358 = arith.extui %357 : vector<1x128xi1> to vector<1x128xi32>
    %359 = arith.sitofp %358 : vector<1x128xi32> to vector<1x128xf32>
    %360 = arith.mulf %310, %359 : vector<1x128xf32>
    %c5_i32 = arith.constant 5 : i32
    %c4_i32_144 = arith.constant 4 : i32
    %361 = arith.muli %c4_i32_144, %c5_i32 : i32
    %c0_i32_145 = arith.constant 0 : i32
    %362 = arith.addi %361, %c0_i32_145 : i32
    %363 = arith.index_cast %arg0 : i32 to index
    %364 = arith.index_cast %362 : i32 to index
    %365 = memref.load %arg5[%363, %364] : memref<2x24xf32, #tpu.memory_space<smem>>
    %c4_i32_146 = arith.constant 4 : i32
    %366 = arith.muli %c4_i32_146, %c5_i32 : i32
    %c1_i32_147 = arith.constant 1 : i32
    %367 = arith.addi %366, %c1_i32_147 : i32
    %368 = arith.index_cast %arg0 : i32 to index
    %369 = arith.index_cast %367 : i32 to index
    %370 = memref.load %arg5[%368, %369] : memref<2x24xf32, #tpu.memory_space<smem>>
    %c4_i32_148 = arith.constant 4 : i32
    %371 = arith.muli %c4_i32_148, %c5_i32 : i32
    %c2_i32_149 = arith.constant 2 : i32
    %372 = arith.addi %371, %c2_i32_149 : i32
    %373 = arith.index_cast %arg0 : i32 to index
    %374 = arith.index_cast %372 : i32 to index
    %375 = memref.load %arg5[%373, %374] : memref<2x24xf32, #tpu.memory_space<smem>>
    %c4_i32_150 = arith.constant 4 : i32
    %376 = arith.muli %c4_i32_150, %c5_i32 : i32
    %c3_i32_151 = arith.constant 3 : i32
    %377 = arith.addi %376, %c3_i32_151 : i32
    %378 = arith.index_cast %arg0 : i32 to index
    %379 = arith.index_cast %377 : i32 to index
    %380 = memref.load %arg5[%378, %379] : memref<2x24xf32, #tpu.memory_space<smem>>
    %381 = arith.subf %375, %365 : f32
    %382 = arith.subf %380, %370 : f32
    %383 = arith.mulf %381, %382 : f32
    %384 = vector.broadcast %375 : f32 to vector<1x128xf32>
    %385 = arith.minimumf %105, %384 : vector<1x128xf32>
    %386 = vector.broadcast %365 : f32 to vector<1x128xf32>
    %387 = arith.maximumf %99, %386 : vector<1x128xf32>
    %388 = arith.subf %385, %387 : vector<1x128xf32>
    %cst_152 = arith.constant 0.000000e+00 : f32
    %389 = vector.broadcast %cst_152 : f32 to vector<1x128xf32>
    %390 = arith.maximumf %388, %389 : vector<1x128xf32>
    %391 = vector.broadcast %380 : f32 to vector<1x128xf32>
    %392 = arith.minimumf %108, %391 : vector<1x128xf32>
    %393 = vector.broadcast %370 : f32 to vector<1x128xf32>
    %394 = arith.maximumf %102, %393 : vector<1x128xf32>
    %395 = arith.subf %392, %394 : vector<1x128xf32>
    %cst_153 = arith.constant 0.000000e+00 : f32
    %396 = vector.broadcast %cst_153 : f32 to vector<1x128xf32>
    %397 = arith.maximumf %395, %396 : vector<1x128xf32>
    %398 = arith.mulf %390, %397 : vector<1x128xf32>
    %cst_154 = arith.constant 1.700000e+00 : f32
    %399 = vector.broadcast %cst_154 : f32 to vector<1x128xf32>
    %400 = arith.mulf %398, %399 : vector<1x128xf32>
    %401 = vector.broadcast %383 : f32 to vector<1x128xf32>
    %402 = arith.addf %109, %401 : vector<1x128xf32>
    %cst_155 = arith.constant 9.99999971E-10 : f32
    %403 = vector.broadcast %cst_155 : f32 to vector<1x128xf32>
    %404 = arith.addf %402, %403 : vector<1x128xf32>
    %cst_156 = arith.constant 0.699999988 : f32
    %405 = vector.broadcast %cst_156 : f32 to vector<1x128xf32>
    %406 = arith.mulf %405, %404 : vector<1x128xf32>
    %407 = arith.cmpf ole, %400, %406 : vector<1x128xf32>
    %408 = arith.extui %407 : vector<1x128xi1> to vector<1x128xi32>
    %409 = arith.sitofp %408 : vector<1x128xi32> to vector<1x128xf32>
    %410 = arith.mulf %360, %409 : vector<1x128xf32>
    %c6_i32 = arith.constant 6 : i32
    %cst_157 = arith.constant 0.000000e+00 : f32
    %411 = vector.broadcast %cst_157 : f32 to vector<1x128xf32>
    %412 = arith.cmpf ogt, %26, %411 : vector<1x128xf32>
    %413 = arith.extui %412 : vector<1x128xi1> to vector<1x128xi32>
    %414 = arith.sitofp %413 : vector<1x128xi32> to vector<1x128xf32>
    %cst_158 = arith.constant 0.000000e+00 : f32
    %415 = vector.broadcast %cst_158 : f32 to vector<1x128xf32>
    %416 = arith.maximumf %14, %415 : vector<1x128xf32>
    %417 = math.absf %14 : vector<1x128xf32>
    %cst_159 = arith.constant 0.000000e+00 : f32
    %418 = vector.broadcast %cst_159 : f32 to vector<1x128xf32>
    %419 = arith.subf %418, %417 : vector<1x128xf32>
    %420 = math.exp %419 : vector<1x128xf32>
    %421 = math.log1p %420 : vector<1x128xf32>
    %422 = arith.addf %416, %421 : vector<1x128xf32>
    %423 = arith.mulf %14, %414 : vector<1x128xf32>
    %424 = arith.subf %422, %423 : vector<1x128xf32>
    %c0_160 = arith.constant 0 : index
    %c0_161 = arith.constant 0 : index
    %c2_162 = arith.constant 2 : index
    %c0_163 = arith.constant 0 : index
    %c0_164 = arith.constant 0 : index
    %425 = vector.load %arg8[%c0_160, %c0_161, %c2_162, %c0_163, %c0_164] : memref<1x1x4x1x128xf32, #tpu.memory_space<vmem>>, vector<1x1x1x1x128xf32>
    %426 = vector.shape_cast %425 : vector<1x1x1x1x128xf32> to vector<1x128xf32>
    %cst_165 = arith.constant 1.000000e+00 : f32
    %427 = vector.broadcast %cst_165 : f32 to vector<1x128xf32>
    %428 = arith.subf %427, %414 : vector<1x128xf32>
    %429 = arith.mulf %428, %410 : vector<1x128xf32>
    %430 = arith.mulf %429, %45 : vector<1x128xf32>
    %431 = arith.addf %26, %430 : vector<1x128xf32>
    %432 = arith.mulf %424, %431 : vector<1x128xf32>
    %433 = arith.addf %426, %432 : vector<1x128xf32>
    %c0_166 = arith.constant 0 : index
    %c0_167 = arith.constant 0 : index
    %c2_168 = arith.constant 2 : index
    %c0_169 = arith.constant 0 : index
    %c0_170 = arith.constant 0 : index
    %434 = vector.load %arg8[%c0_166, %c0_167, %c2_168, %c0_169, %c0_170] : memref<1x1x4x1x128xf32, #tpu.memory_space<vmem>>, vector<1x1x1x1x128xf32>
    %435 = vector.shape_cast %434 : vector<1x1x1x1x128xf32> to vector<1x128xf32>
    %436 = vector.shape_cast %433 : vector<1x128xf32> to vector<1x1x1x1x128xf32>
    tpu.vector_store %arg8[%c0_166, %c0_167, %c2_168, %c0_169, %c0_170], %436 {strides = array<i32>} : memref<1x1x4x1x128xf32, #tpu.memory_space<vmem>>, vector<1x1x1x1x128xf32>,
    return
  }
  func.func @transform_0(%arg0: i32, %arg1: i32, %arg2: i32, %arg3: i32) -> (i32, i32) {
    %c0_i32 = arith.constant 0 : i32
    %c0_i32_0 = arith.constant 0 : i32
    %c0_i32_1 = arith.constant 0 : i32
    return %c0_i32, %c0_i32_0 : i32, i32
  }
  func.func @transform_1(%arg0: i32, %arg1: i32, %arg2: i32, %arg3: i32) -> (i32, i32) {
    %c0_i32 = arith.constant 0 : i32
    %c0_i32_0 = arith.constant 0 : i32
    %c0_i32_1 = arith.constant 0 : i32
    return %c0_i32, %c0_i32_0 : i32, i32
  }
  func.func @transform_2(%arg0: i32, %arg1: i32, %arg2: i32, %arg3: i32) -> (i32, i32, i32, i32, i32) {
    %c1_i32 = arith.constant 1 : i32
    %0 = arith.muli %arg1, %c1_i32 : i32
    %1 = arith.addi %0, %arg3 : i32
    %c0_i32 = arith.constant 0 : i32
    %c0_i32_0 = arith.constant 0 : i32
    %c0_i32_1 = arith.constant 0 : i32
    return %arg0, %arg2, %c0_i32, %1, %c0_i32_0 : i32, i32, i32, i32, i32
  }
  func.func @transform_3(%arg0: i32, %arg1: i32, %arg2: i32, %arg3: i32) -> (i32, i32, i32, i32, i32) {
    %c1_i32 = arith.constant 1 : i32
    %0 = arith.muli %arg1, %c1_i32 : i32
    %1 = arith.addi %0, %arg3 : i32
    %c0_i32 = arith.constant 0 : i32
    %c0_i32_0 = arith.constant 0 : i32
    %c0_i32_1 = arith.constant 0 : i32
    return %arg0, %arg2, %c0_i32, %1, %c0_i32_0 : i32, i32, i32, i32, i32
  }
  func.func @transform_4(%arg0: i32, %arg1: i32, %arg2: i32, %arg3: i32) -> (i32, i32, i32, i32, i32) {
    %c0_i32 = arith.constant 0 : i32
    %c0_i32_0 = arith.constant 0 : i32
    %c0_i32_1 = arith.constant 0 : i32
    %c0_i32_2 = arith.constant 0 : i32
    return %arg0, %arg1, %c0_i32, %c0_i32_0, %c0_i32_1 : i32, i32, i32, i32, i32
  }
}

</mosaic_0001>

<bundles_post_ra>
// kernel: tpu_custom_call.1
= control target key start
LH: loop header
LB: loop body
LE: loop exit
PB: predicated region body
PF: predicated region fallthrough
CT: control target
= control target key end

     0   :  { %s2145_s0 = inlined_call_operand.vmem [shape: f32[3,2], index: 0, kind: input, shape index: {}]   ;;  %s2146_s1 = inlined_call_operand.vmem [shape: f32[2,24], index: 1, kind: input, shape index: {}]   ;;  %s2147_s2 = inlined_call_operand.hbm [shape: f32[2,3,9,1,128], index: 2, kind: input, shape index: {}]   ;;  %s2148_s3 = inlined_call_operand.hbm [shape: f32[2,3,10,1,128], index: 3, kind: input, shape index: {}]   ;;  %s2149_s4 = inlined_call_operand.hbm [shape: f32[2,1,4,1,128], index: 4, kind: output, shape index: {}]  }
   0x1   :  { %2165 = sst [smem:[#allocation24_spill]] %s2145_s0 }
   0x2   :  { %2166 = sst [smem:[#allocation25_spill]] %s2146_s1 }
   0x3   :  { %2167 = sst [smem:[#allocation26_spill]] %s2147_s2 }
   0x4   :  { %2168 = sst [smem:[#allocation27_spill]] %s2148_s3 }
   0x5   :  { %2169 = sst [smem:[#allocation28_spill]] %s2149_s4 }
   0x6   :  { %9 = vsyncpa [#allocation5], 0 }
   0x7   :  { %10 = vsyncpa [#allocation7], 0 }
   0x8   :  { %11 = vsyncpa [#allocation3], 0 }
   0x9   :  { %13 = vsyncpa [#allocation3 + $0x1], 0 }
   0xa   :  { %14 = vsyncpa [#allocation10], 0 }
   0xb   :  { %16 = vsyncpa [#allocation10 + $0x1], 0 }
   0xc   :  { %17 = vsyncpa [#allocation4], 0 }
   0xd   :  { %19 = vsyncpa [#allocation4 + $0x1], 0  ;;  %s1470_s15 = smov 0   ;;  %s1472_s16 = smov 0  }
   0xe   :  { %s1474_s17 = smov 0   ;;  %s1476_s18 = smov 0  }
   0xf   :  { %s1478_s19 = smov 0   ;;  %s1480_s20 = smov 0  }
  0x10   :  { %s1482_s21 = smov 0   ;;  %s1484_s22 = smov 0  }
  0x11   :  { %s1486_s23 = smov 0   ;;  %s1488_s24 = smov 0  }
  0x12   :  { %s1490_s25 = smov 0  }
  0x13 LB: > { %2170 = sst [smem:[#allocation17_spill]] %s1392_s15  ;;  %s969_s26 = sadd.s32 4294967295, %s1432_s25   ;;  %s1432_s25 = sphi %s1490_s25, %s2225_s25   ;;  %s1428_s24 = sphi %s1488_s24, %s2224_s24   ;;  %s1424_s23 = sphi %s1486_s23, %s2223_s23   ;;  %s1420_s22 = sphi %s1484_s22, %s2222_s22   ;;  %s1416_s21 = sphi %s1482_s21, %s2221_s21   ;;  %s1412_s20 = sphi %s1480_s20, %s2213_s20   ;;  %s1408_s19 = sphi %s1478_s19, %s2220_s19   ;;  %s1404_s18 = sphi %s1476_s18, %s2219_s18   ;;  %s1400_s17 = sphi %s1474_s17, %s2218_s17   ;;  %s1396_s16 = sphi %s1472_s16, %s2217_s16   ;;  %s1392_s15 = sphi %s1470_s15, %s2216_s15  }
  0x14   : > { %2171 = sst [smem:[#allocation18_spill]] %s1412_s20  ;;  %s970_s27 = sadd.s32 4294967294, %s1432_s25  }
  0x15   : > { %2172 = sst [smem:[#allocation19_spill]] %s1432_s25  ;;  %p113_p0 = scmp.ne.s32.totalorder %s1412_s20, %s1408_s19 }
  0x16   : > { %p114_p1 = scmp.eq.s32.totalorder %s1432_s25, 0  ;;  %p119_p2 = scmp.ne.s32.totalorder %s1408_s19, %s1404_s18 }
  0x17   : > { %p1530_p3 = scmp.eq.s32.totalorder %s969_s26, 0  ;;  %p176_p5 = scmp.ne.s32.totalorder %s1400_s17, %s1396_s16 }
  0x18   : > { %p1535_p4 = por %p114_p1, %p113_p0  ;;  %p177_p7 = scmp.eq.s32.totalorder %s969_s26, 5 }
  0x19   : > { %s2173_s29 = scalar_select %p1530_p3, 1, 0 }
  0x1a   : > { %p1543_p6 = por %p1530_p3, %p119_p2  ;;  %p182_p8 = scmp.ne.s32.totalorder %s1396_s16, %s1392_s15 }
  0x1b   : > { %p183_p9 = scmp.eq.s32.totalorder %s970_s27, 5  ;;  %p1549_p10 = por %p177_p7, %p176_p5 }
  0x1c   : > { %s2175_s6 = scalar_select %p1543_p6, 1, 0 }
  0x1d   : > { %s2176_s7 = scalar_select %p1549_p10, 1, 0 }
  0x1e   : > { %p971_p11 = scmp.ge.s32.totalorder %s1432_s25, 1  ;;  %p1554_p12 = por %p183_p9, %p182_p8 }
  0x1f   : > { %p190_p13 = scmp.lt.s32.totalorder %s1432_s25, 7  ;;  %s2179_s0 = sld [smem:[#allocation24_spill]] }
  0x20   : > { %s2177_s8 = scalar_select %p1554_p12, 1, 0 }
  0x21   : > { %p1562_p0 = pnand %p971_p11, %p190_p13  ;;  %p1068_p2 = scmp.lt.s32.totalorder %s1432_s25, 6 }
  0x22   : > { %2178 = sst [smem:[#allocation20_spill]] %s2177_s8  ;;  %s2181_s1 = sld [smem:[#allocation25_spill]] }
  0x23   : > { %s2180_s12 = scalar_select %p1562_p0, 1, 0 }
  0x24   : > { %p1048_p1 = pneg %p1562_p0  ;;  %p1580_p7 = pnand %p1068_p2, %p1535_p4 }
  0x25   : > { %s203_s11 = sshll.u32 %s2179_s0, 4  ;;  %s204_s11 = int_to_ptr.vmem [resolvable:$true] %s203_s11 }
  0x26   : > { %p1574_p5 = pnand %p1048_p1, %p1530_p3  ;;  %s1208_s9 = scalar_lea.vmem %s204_s11, 64 }
  0x27   : > { %s2183_s27 = scalar_select %p1580_p7, 1, 0 }
  0x28   : > { %s214_s18 = sshll.u32 %s2181_s1, 4  ;;  %p1209_p8 = scmp.ne.s32.totalorder %s204_s11, %s1208_s9  ;;  %s215_s18 = int_to_ptr.vmem [resolvable:$true] %s214_s18 }
  0x29   : > { %p1210_p9 = pneg %p1574_p5  ;;  %p1216_p12 = scmp.lt.s32.totalorder %s204_s11, %s204_s11 }
  0x2a   : > { %p1217_p10 = scmp.lt.s32.totalorder %s1208_s9, %s1208_s9 }
  0x2b   : > { %p1211_p11 = pnand %p1210_p9, %p1209_p8 }
  0x2c   : > { %p1218_p6 = por %p1217_p10, %p1216_p12 }
  0x2d   : > { %p1212_p13 = pneg %p1211_p11 }
  0x2f   : > { %p1219_p1 = pnand %p1218_p6, %p1212_p13 }
  0x31   : > { %1222 = shalt.err (!%p1219_p1)
}
  0x32   : > { %s1434_s10 = smov [#allocation2]   ;;  %s1223_s5 = scalar_lea.vmem %s215_s18, 32 }
  0x33   : > { %1051 = dma.vmem_to_smem (!%p1574_p5), %s204_s11, 64, %s1434_s10, [#allocation5]  }
  0x34   : > { %p1224_p4 = scmp.ne.s32.totalorder %s215_s18, %s1223_s5  ;;  %p1231_p0 = scmp.lt.s32.totalorder %s215_s18, %s215_s18 }
  0x35   : > { %p1232_p7 = scmp.lt.s32.totalorder %s1223_s5, %s1223_s5 }
  0x36   : > { %p1226_p2 = pnand %p1224_p4, %p1210_p9 }
  0x37   : > { %p1233_p8 = por %p1232_p7, %p1231_p0 }
  0x38   : > { %p1227_p3 = pneg %p1226_p2 }
  0x3a   : > { %p1234_p11 = pnand %p1233_p8, %p1227_p3 }
  0x3c   : > { %1237 = shalt.err (!%p1234_p11)
}
  0x3d   : > { %s1435_s13 = smov [#allocation6]   ;;  %s43_s11 = sadd.s32 1, %s1424_s23 }
  0x3e   : > { %1054 = dma.vmem_to_smem (!%p1574_p5), %s215_s18, 32, %s1435_s13, [#allocation7]  }
  0x3f   : > { %p45_p6 = scmp.ge.s32.totalorder %s43_s11, 3  ;;  %s51_s14 = sadd.s32 1, %s1428_s24 }
  0x40   : > { %s1593_s9 = sand.u32 1, %s1412_s20   ;;  %s1025_s10 = smul.u32 9, %s1424_s23 }
  0x41   : > { %s2227_s11 = smov (%p45_p6, %s43_s11), 0  ;;  %s2229_s14 = smov (!%p45_p6, %s51_s14), %s1428_s24 }
  0x42   : > { %2184 = sst [smem:[#allocation21_spill]] %s2227_s11  ;;  %s100_s26 = ssub.s32 %s1424_s23, %s2227_s11 }
  0x43   : > { %p53_p3 = scmp.ge.s32.totalorder %s2229_s14, 2  ;;  %s1024_s5 = smul.u32 9, %s1593_s9 }
  0x44   : > { %s1026_s18 = smul.u32 27, %s1428_s24  ;;  %s2186_s2 = sld [smem:[#allocation26_spill]] }
  0x45   : > { %s2231_s14 = smov (%p53_p3, %s2229_s14), 0  ;;  %s2187_s11 = sadd.s32 1, %s1400_s17 }
  0x46   : > { %2185 = sst [smem:[#allocation22_spill]] %s2231_s14  ;;  %s237_s13 = sadd.s32 %s1026_s18, %s1025_s10 }
  0x47   : > { %s99_s28 = ssub.s32 %s1428_s24, %s2231_s14  ;;  %s975_s30 = sshll.u32 %s237_s13, 4 }
  0x48   : > { %s101_s0 = sor.u32 %s100_s26, %s99_s28  ;;  %p164_p10 = scmp.eq.s32.totalorder %s99_s28, 0 }
  0x49   : > { %p104_p12 = scmp.eq.s32.totalorder %s101_s0, 0  ;;  %s2188_s4 = sadd.s32 1, %s1412_s20 }
  0x4a   : > { %s1610_s15 = scalar_lea.hbm %s2186_s2, %s975_s30  ;;  %s229_s18 = scalar_lea.vmem [#allocation8], %s1024_s5 }
  0x4b   : > { %s1615_s25 = scalar_select %p164_p10, %s1400_s17, %s2187_s11  }
  0x4c   : > { %s1620_s10 = scalar_select %p104_p12, %s1412_s20, %s2188_s4  }
  0x4d   : > { %s240_s13 = sshll.u32 %s229_s18, 4  ;;  %s226_s0 = scalar_lea.sflag [#allocation3], %s1593_s9  ;;  %s1622_s13 = int_to_ptr.vmem [resolvable:$true] %s240_s13 }
  0x4e   : > { %2189 = sst [smem:[#allocation23_spill]] %s1620_s10  ;;  %s1238_s28 = scalar_lea.hbm %s1610_s15, 144 }
  0x4f   : > { %p1239_p0 = scmp.ne.s32.totalorder %s1610_s15, %s1238_s28  ;;  %p2190_p5 = scmp.ne.s32.totalorder %s2183_s27, 0 }
  0x50   : > { %s1243_s8 = scalar_lea.hbm %s2186_s2, 864  ;;  %p1244_p1 = scmp.lt.u32.totalorder %s1610_s15, %s2186_s2 }
  0x51   : > { %p1240_p7 = pneg %p2190_p5  ;;  %p1245_p4 = scmp.lt.u32.totalorder %s1243_s8, %s1238_s28 }
  0x52   : > { %p1247_p8 = scmp.lt.u32.totalorder %s1238_s28, %s1610_s15 }
  0x53   : > { %p1241_p9 = pnand %p1240_p7, %p1239_p0  ;;  %p1246_p2 = por %p1245_p4, %p1244_p1 }
  0x55   : > { %p1242_p13 = pneg %p1241_p9  ;;  %p1248_p11 = por %p1247_p8, %p1246_p2 }
  0x57   : > { %p1249_p6 = pnand %p1248_p11, %p1242_p13 }
  0x59   : > { %1252 = shalt.err (!%p1249_p6)
}
  0x5a   : > { %s1253_s26 = scalar_lea.vmem %s1622_s13, 144  ;;  %s1436_s5 = smov [#allocation8]  }
  0x5b   : > { %p1254_p3 = scmp.ne.s32.totalorder %s1622_s13, %s1253_s26  ;;  %s1258_s18 = sshll.u32 %s1436_s5, 4  ;;  %s1259_s18 = int_to_ptr.vmem [resolvable:$false] %s1258_s18 }
  0x5c   : > { %s1260_s1 = scalar_lea.vmem %s1259_s18, 288  ;;  %p1261_p0 = scmp.lt.s32.totalorder %s1622_s13, %s1259_s18 }
  0x5d   : > { %p1256_p10 = pnand %p1254_p3, %p1240_p7  ;;  %p1262_p9 = scmp.lt.s32.totalorder %s1260_s1, %s1253_s26 }
  0x5f   : > { %p1257_p12 = pneg %p1256_p10  ;;  %p1263_p1 = por %p1262_p9, %p1261_p0 }
  0x61   : > { %p1264_p4 = pnand %p1263_p1, %p1257_p12 }
  0x63   : > { %1267 = shalt.err (!%p1264_p4)
}
  0x64   : > { %s1437_s28 = smov 16   ;;  %s1438_s30 = smov 1  }
  0x65   : > { %1058 = dma.hbm_to_vmem [thread:$0]  (!%p2190_p5), %s1610_s15, 144, %s1622_s13, %s226_s0, %s1437_s28, %s1437_s28, %s1438_s30  }
  0x66   : > { %s1027_s8 = smul.u32 10, %s1593_s9  ;;  %s2191_s3 = sld [smem:[#allocation27_spill]] }
  0x67   : > { %s1028_s11 = smul.u32 10, %s1424_s23  ;;  %s251_s20 = scalar_lea.sflag [#allocation10], %s1593_s9 }
  0x68   : > { %s1029_s4 = smul.u32 30, %s1428_s24  ;;  %s254_s26 = scalar_lea.vmem [#allocation9], %s1027_s8 }
  0x69   : > { %s265_s5 = sshll.u32 %s254_s26, 4  ;;  %s1658_s5 = int_to_ptr.vmem [resolvable:$true] %s265_s5 }
  0x6a   : > { %s262_s18 = sadd.s32 %s1029_s4, %s1028_s11 }
  0x6b   : > { %s976_s1 = sshll.u32 %s262_s18, 4 }
  0x6c   : > { %s1663_s10 = scalar_lea.hbm %s2191_s3, %s976_s1  ;;  %s1273_s8 = scalar_lea.hbm %s2191_s3, 960 }
  0x6d   : > { %s1268_s15 = scalar_lea.hbm %s1663_s10, 160  ;;  %p1274_p11 = scmp.lt.u32.totalorder %s1663_s10, %s2191_s3 }
  0x6e   : > { %p1269_p13 = scmp.ne.s32.totalorder %s1663_s10, %s1268_s15  ;;  %p1275_p6 = scmp.lt.u32.totalorder %s1273_s8, %s1268_s15 }
  0x6f   : > { %p1277_p10 = scmp.lt.u32.totalorder %s1268_s15, %s1663_s10 }
  0x70   : > { %p1271_p2 = pnand %p1269_p13, %p1240_p7  ;;  %p1276_p3 = por %p1275_p6, %p1274_p11 }
  0x72   : > { %p1272_p8 = pneg %p1271_p2  ;;  %p1278_p12 = por %p1277_p10, %p1276_p3 }
  0x74   : > { %p1279_p0 = pnand %p1278_p12, %p1272_p8 }
  0x76   : > { %1282 = shalt.err (!%p1279_p0)
}
  0x77   : > { %s1283_s2 = scalar_lea.vmem %s1658_s5, 160  ;;  %s1439_s14 = smov [#allocation9]  }
  0x78   : > { %p1284_p9 = scmp.ne.s32.totalorder %s1658_s5, %s1283_s2  ;;  %s1288_s26 = sshll.u32 %s1439_s14, 4  ;;  %s1289_s26 = int_to_ptr.vmem [resolvable:$false] %s1288_s26 }
  0x79   : > { %s1290_s18 = scalar_lea.vmem %s1289_s26, 320  ;;  %p1291_p13 = scmp.lt.s32.totalorder %s1658_s5, %s1289_s26 }
  0x7a   : > { %p1286_p1 = pnand %p1284_p9, %p1240_p7  ;;  %p1292_p2 = scmp.lt.s32.totalorder %s1290_s18, %s1283_s2 }
  0x7c   : > { %p1287_p4 = pneg %p1286_p1  ;;  %p1293_p11 = por %p1292_p2, %p1291_p13 }
  0x7e   : > { %p1294_p6 = pnand %p1293_p11, %p1287_p4 }
  0x80   : > { %1297 = shalt.err (!%p1294_p6)
}
  0x81   : > { %1061 = dma.hbm_to_vmem [thread:$0]  (!%p2190_p5), %s1663_s10, 160, %s1658_s5, %s251_s20, %s1437_s28, %s1437_s28, %s1438_s30  }
  0x82   : > { %p2192_p7 = scmp.ne.s32.totalorder %s2180_s12, 0 }
  0x83   : > { %p2193_p8 = scmp.ne.s32.totalorder (!%p2192_p7), %s2173_s29, 0 }
  0x84   : > { %277 = sbr.rel (%p2192_p7) target bundleno = 507 (0x1fb), region = 36 }
  0x8b   : > { %1371 = dma.done.wait (%p2193_p8), [#allocation5], 64  }
  0x8c   : > { %1373 = vsyncadd (%p2193_p8), [#allocation5], 4294967232 }
  0x8d   : > { %1375 = dma.done.wait (%p2193_p8), [#allocation7], 32  }
  0x8e   : > { %1377 = vsyncadd (%p2193_p8), [#allocation7], 4294967264  ;;  %s287_s27 = sand.u32 1, %s1408_s19   ;;  %p2194_p5 = scmp.ne.s32.totalorder %s2175_s6, 0 }
  0x8f   : > { %s1030_s9 = smul.u32 9, %s287_s27  ;;  %s288_s20 = scalar_lea.sflag [#allocation3], %s287_s27 }
  0x91   : > { %s1705_s10 = scalar_lea.vmem [#allocation8], %s1030_s9 }
  0x92   : > { %1379 = dma.done.wait (%p2194_p5), %s288_s20, 144  }
  0x93   : > { %1381 = vsyncadd (%p2194_p5), %s288_s20, 4294967152  ;;  %s1031_s12 = smul.u32 10, %s287_s27  ;;  %s297_s28 = scalar_lea.sflag [#allocation10], %s287_s27 }
  0x95   : > { %s1711_s30 = scalar_lea.vmem [#allocation9], %s1031_s12 }
  0x96   : > { %1383 = dma.done.wait (%p2194_p5), %s297_s28, 160  }
  0x97   : > { %1385 = vsyncadd (%p2194_p5), %s297_s28, 4294967136 }
  0x98   : > { %305 = sfence }
  0x99   : > { %s2164_s29 = sand.u32 1, %s1396_s16   ;;  %p333_p3 = scmp.eq.s32.totalorder %s1416_s21, 0 }
  0x9a   : > { %s980_s5 = sshll.u32 %s2164_s29, 2  ;;  %v1440_v0 = vmov (%p333_p3), 0.0  }
  0x9b   : > { %s1721_s1 = scalar_lea.vmem [#allocation11], %s980_s5  ;;  %338 = sbr.rel (!%p333_p3) target bundleno = 162 (0xa2), region = 56 }
  0x9c   : > { %339 = vst [vmem:[%s1721_s1] sm:$0x1] (%p333_p3), %v1440_v0  ;;  %340 = vst [vmem:[%s1721_s1 + $0x1] sm:$0x1] (%p333_p3), %v1440_v0 }
  0x9d   : > { %341 = vst [vmem:[%s1721_s1 + $0x2] sm:$0x1] (%p333_p3), %v1440_v0  ;;  %342 = vst [vmem:[%s1721_s1 + $0x3] sm:$0x1] (%p333_p3), %v1440_v0 }
  0xa2 PF: > { %v1728_v1 = vld [vmem:[%s1705_s10] sm:$0x1]  ;;  %v1731_v2 = vld [vmem:[%s1705_s10 + $0x1] sm:$0x1]  ;;  %v1734_v3 = vld [vmem:[%s1705_s10 + $0x2] sm:$0x1]  ;;  %v367_v4 = vlaneseq }
  0xa3   : > { %v1737_v5 = vld [vmem:[%s1705_s10 + $0x3] sm:$0x1]  ;;  %v1740_v6 = vld [vmem:[%s1705_s10 + $0x4] sm:$0x1]  ;;  %v1743_v7 = vld [vmem:[%s1711_s30] sm:$0x1] }
  0xa4   : > { %v1746_v8 = vld [vmem:[%s1711_s30 + $0x1] sm:$0x1]  ;;  %v987_v9 = vld [vmem:[%s1711_s30 + $0x2] sm:$0x1]  ;;  %v988_v10 = vld [vmem:[%s1711_s30 + $0x3] sm:$0x1] }
  0xa5   : > { %v989_v11 = vld [vmem:[%s1711_s30 + $0x4] sm:$0x1]  ;;  %v1752_v12 = vld [vmem:[%s1711_s30 + $0x5] sm:$0x1]  ;;  %s991_s6 = sshll.u32 %s1416_s21, 7  ;;  %v368_v13 = vshrl.u32 %v367_v4, 7 }
  0xa6   : > { %s1755_s15 = sld [smem:[#allocation2 + %s991_s6]]  ;;  %s365_s13 = sadd.s32 1, %s991_s6  ;;  %v370_v14 = vand.u32 127, %v367_v4  ;;  %v993_v15 = vmul.f32 -1.442695, %v1728_v1  ;;  %vm398_vm0 = vcmask 1040384  }
  0xa7   : > { %s1758_s0 = sld [smem:[#allocation2 + %s365_s13]]  ;;  %v373_v16 = vmul.u32 128, %v368_v13  ;;  %v994_v17 = vmul.f32 -1.442695, %v1731_v2  ;;  %v399_v18 = vsel %vm398_vm0, %v1752_v12, -inf  ;;  %v1441_v22 = vmov 0.0  }
  0xa8   : > { %1168 = vpow2.f32 %v993_v15  ;;  %400 = vmax.xlane.f32.xlu0 %v399_v18 }
  0xa9   : > { %v376_v19 = vadd.s32 %v373_v16, %v370_v14  ;;  %1170 = vpow2.f32 %v994_v17 }
  0xab   : > { %v1762_v20 = vcvt.s32.f32 %v376_v19 }
  0xad   : > { %vm378_vm1 = vcmp.lt.f32.partialorder %v1762_v20, 16.0  ;;  %v381_v21 = vadd.f32 0.5, %v1762_v20 }
  0xae   : > { %v1767_v23 = vsel %vm378_vm1, 1.0, %v1441_v22 }
  0xaf   : > { %v1769_v24 = vmul.f32 0.25, %v381_v21 }
  0xb1   : > { %v383_v25 = vfloor.f32 %v1769_v24 }
  0xb2   : > { %v1169_v26 = vpop.eup %1168 }
  0xb3   : > { %v1171_v27 = vpop.eup %1170  ;;  %v1774_v28 = vmul.f32 4.0, %v383_v25  ;;  %v389_v29 = vadd.f32 1.0, %v1169_v26 }
  0xb4   : > { %v395_v30 = vadd.f32 1.0, %v1171_v27 }
  0xb5   : > { %v385_v31 = vsub.f32 %v1762_v20, %v1774_v28  ;;  %1172 = vrcp.f32 %v389_v29 }
  0xb6   : > { %1174 = vrcp.f32 %v395_v30 }
  0xbf   : > { %v1778_v32 = vpop.eup %1172 }
  0xc0   : > { %v1780_v33 = vpop.eup %1174 }
 0x135   : > { %v401_v34 = vpop.xlane.xlu0 %400 }
 0x136   : > { %v402_v35 = vrot.slane %v401_v34, 4 }
 0x138   : > { %v403_v36 = vmax.f32 %v401_v34, %v402_v35 }
 0x13a   : > { %v404_v37 = vrot.slane %v403_v36, 2 }
 0x13c   : > { %v405_v38 = vmax.f32 %v403_v36, %v404_v37 }
 0x13e   : > { %v406_v39 = vrot.slane %v405_v38, 1 }
 0x140   : > { %v407_v40 = vmax.f32 %v405_v38, %v406_v39 }
 0x142   : > { %1032 = vpush %v407_v40 }
 0x173   : > { %s1033_s21 = spop %1032 }
 0x174   : > { %p409_p10 = scmp.gt.f32.partialorder %s1033_s21, 0.0 }
 0x175   : > { %v415_v41 = vand.u32 (%p409_p10), 2147483647, %v1728_v1  ;;  %v432_v42 = vand.u32 (%p409_p10), 2147483647, %v1731_v2  ;;  %v455_v43 = vsub.f32 (%p409_p10), %v1734_v3, %v987_v9  ;;  %v457_v45 = vsub.f32 (%p409_p10), %v1737_v5, %v988_v10  ;;  %v1787_v46 = vld [vmem:[%s1705_s10 + $0x5] sm:$0x1] (%p409_p10) }
 0x176   : > { %412 = sbr.rel (!%p409_p10) target bundleno = 425 (0x1a9), region = 60  ;;  %v468_v49 = vand.u32 (%p409_p10), 2147483647, %v1787_v46  ;;  %v1791_v50 = vmul.f32 (%p409_p10), %v1752_v12, %v989_v11  ;;  %v1794_v53 = vld [vmem:[%s1705_s10 + $0x6] sm:$0x1] (%p409_p10) }
 0x177   : > { %v416_v44 = vsub.f32 (%p409_p10), 0.0, %v415_v41  ;;  %v433_v47 = vsub.f32 (%p409_p10), 0.0, %v432_v42  ;;  %v456_v48 = vand.u32 (%p409_p10), 2147483647, %v455_v43  ;;  %v458_v52 = vand.u32 (%p409_p10), 2147483647, %v457_v45 }
 0x178   : > { %v469_v55 = vsub.f32 (%p409_p10), 0.0, %v468_v49  ;;  %v490_v57 = vand.u32 (%p409_p10), 2147483647, %v1794_v53  ;;  %v1798_v58 = vld [vmem:[%s1705_s10 + $0x7] sm:$0x1] (%p409_p10)  ;;  %v414_v43 = vmax.f32 (%p409_p10), %v1728_v1, 0.0 }
 0x179   : > { %v417_v51 = vmul.f32 (%p409_p10), 1.442695, %v416_v44  ;;  %v434_v54 = vmul.f32 (%p409_p10), 1.442695, %v433_v47  ;;  %v459_v56 = vadd.f32 (%p409_p10), %v458_v52, %v456_v48  ;;  %v995_v59 = vld [vmem:[%s1721_s1 + $0x1] sm:$0x1] (%p409_p10)  ;;  %v429_v44 = vmul.f32 (%p409_p10), %v1743_v7, %v1728_v1 }
 0x17a   : > { %v470_v60 = vmul.f32 (%p409_p10), 1.442695, %v469_v55  ;;  %v512_v61 = vand.u32 (%p409_p10), 2147483647, %v1798_v58  ;;  %v491_v63 = vsub.f32 (%p409_p10), 0.0, %v490_v57  ;;  %v431_v47 = vmax.f32 (%p409_p10), %v1731_v2, 0.0 }
 0x17b   : > { %1176 = vpow2.f32 (%p409_p10), %v417_v51  ;;  %v460_v62 = vmul.f32 (%p409_p10), %v459_v56, %v1791_v50  ;;  %v1804_v0 = vld [vmem:[%s1705_s10 + $0x8] sm:$0x1] (%p409_p10)  ;;  %v998_v55 = vld [vmem:[%s1711_s30 + $0x6] sm:$0x1] (%p409_p10)  ;;  %v467_v56 = vmax.f32 (%p409_p10), %v1787_v46, 0.0 }
 0x17c   : > { %1178 = vpow2.f32 (%p409_p10), %v434_v54  ;;  %v513_v4 = vsub.f32 (%p409_p10), 0.0, %v512_v61  ;;  %v534_v9 = vand.u32 (%p409_p10), 2147483647, %v1804_v0  ;;  %v492_v11 = vmul.f32 (%p409_p10), 1.442695, %v491_v63 }
 0x17d   : > { %1180 = vpow2.f32 %v470_v60  ;;  %v461_v10 = vadd.f32 %v995_v59, %v460_v62  ;;  %v446_v54 = vmul.f32 %v1746_v8, %v1731_v2  ;;  %v448_v60 = vld [vmem:[%s1721_s1] sm:$0x1] }
 0x17e   : > { %v514_v13 = vmul.f32 1.442695, %v513_v4  ;;  %v535_v14 = vsub.f32 0.0, %v534_v9  ;;  %1182 = vpow2.f32 %v492_v11 }
 0x17f   : > { %996 = vst [vmem:[%s1721_s1 + $0x1] sm:$0x1] %v461_v10  ;;  %v482_v10 = vmul.f32 %v998_v55, %v1787_v46  ;;  %v511_v46 = vmax.f32 %v1798_v58, 0.0 }
 0x180   : > { %1184 = vpow2.f32 %v514_v13  ;;  %v536_v15 = vmul.f32 1.442695, %v535_v14 }
 0x182   : > { %1186 = vpow2.f32 %v536_v15  ;;  %v1005_v15 = vld [vmem:[%s1721_s1 + $0x3] sm:$0x1] }
 0x185   : > { %v1177_v16 = vpop.eup %1176 }
 0x186   : > { %v1179_v17 = vpop.eup %1178  ;;  %v419_v18 = vadd.f32 1.0, %v1177_v16  ;;  %v422_v26 = vmul.f32 -0.5, %v1177_v16  ;;  %v425_v40 = vand.u32 2147483647, %v1177_v16 }
 0x187   : > { %v436_v19 = vadd.f32 1.0, %v1179_v17  ;;  %v1181_v21 = vpop.eup %1180  ;;  %v439_v29 = vmul.f32 -0.5, %v1179_v17  ;;  %v442_v42 = vand.u32 2147483647, %v1179_v17 }
 0x188   : > { %1188 = vlog2.f32 %v419_v18  ;;  %v472_v27 = vadd.f32 1.0, %v1181_v21  ;;  %v1183_v30 = vpop.eup %1182  ;;  %v475_v35 = vmul.f32 -0.5, %v1181_v21  ;;  %v423_v37 = vadd.f32 1.0, %v422_v26  ;;  %v1000_v26 = vld [vmem:[%s1711_s30 + $0x7] sm:$0x1] }
 0x189   : > { %1190 = vlog2.f32 %v436_v19  ;;  %v494_v36 = vadd.f32 1.0, %v1183_v30  ;;  %v440_v41 = vadd.f32 1.0, %v439_v29  ;;  %v497_v45 = vmul.f32 -0.5, %v1183_v30 }
 0x18a   : > { %1192 = vlog2.f32 %v472_v27  ;;  %v1185_v34 = vpop.eup %1184  ;;  %v476_v48 = vadd.f32 1.0, %v475_v35  ;;  %v424_v52 = vmul.f32 %v1177_v16, %v423_v37  ;;  %v478_v57 = vand.u32 2147483647, %v1181_v21 }
 0x18b   : > { %v516_v38 = vadd.f32 1.0, %v1185_v34  ;;  %1194 = vlog2.f32 %v494_v36  ;;  %v519_v49 = vmul.f32 -0.5, %v1185_v34  ;;  %vm1819_vm2 = vcmp.lt.f32.partialorder %v425_v40, 0.0004427343  ;;  %v1002_v36 = vld [vmem:[%s1711_s30 + $0x8] sm:$0x1] }
 0x18c   : > { %v1808_v39 = vpop.eup %1186  ;;  %v441_v1 = vmul.f32 %v1179_v17, %v440_v41  ;;  %vm1823_vm3 = vcmp.lt.f32.partialorder %v442_v42, 0.0004427343  ;;  %v498_v63 = vadd.f32 1.0, %v497_v45  ;;  %v500_v2 = vand.u32 2147483647, %v1183_v30 }
 0x18d   : > { %1196 = vlog2.f32 %v516_v38  ;;  %v538_v51 = vadd.f32 1.0, %v1808_v39  ;;  %v541_v8 = vmul.f32 -0.5, %v1808_v39  ;;  %v477_v9 = vmul.f32 %v1181_v21, %v476_v48 }
 0x18e   : > { %v520_v11 = vadd.f32 1.0, %v519_v49  ;;  %vm1831_vm4 = vcmp.lt.f32.partialorder %v478_v57, 0.0004427343  ;;  %v489_v16 = vmax.f32 %v1794_v53, 0.0  ;;  %v522_v17 = vand.u32 2147483647, %v1185_v34 }
 0x18f   : > { %1198 = vlog2.f32 %v538_v51  ;;  %v499_v29 = vmul.f32 %v1183_v30, %v498_v63  ;;  %vm1840_vm5 = vcmp.lt.f32.partialorder %v500_v2, 0.0004427343  ;;  %v542_v37 = vadd.f32 1.0, %v541_v8  ;;  %v1004_v57 = vld [vmem:[%s1711_s30 + $0x9] sm:$0x1] }
 0x190   : > { %v521_v42 = vmul.f32 %v1185_v34, %v520_v11  ;;  %vm1848_vm6 = vcmp.lt.f32.partialorder %v522_v17, 0.0004427343  ;;  %v504_v51 = vmul.f32 %v1000_v26, %v1794_v53  ;;  %v548_v2 = vmul.f32 %v1004_v57, %v1804_v0 }
 0x192   : > { %v1189_v59 = vpop.eup %1188 }
 0x193   : > { %v1191_v61 = vpop.eup %1190  ;;  %v421_v62 = vmul.f32 0.6931472, %v1189_v59  ;;  %v533_v59 = vmax.f32 %v1804_v0, 0.0 }
 0x194   : > { %v438_v4 = vmul.f32 0.6931472, %v1191_v61  ;;  %v1193_v13 = vpop.eup %1192 }
 0x195   : > { %v427_v14 = vsel %vm1819_vm2, %v424_v52, %v421_v62  ;;  %v474_v21 = vmul.f32 0.6931472, %v1193_v13  ;;  %v1195_v38 = vpop.eup %1194 }
 0x196   : > { %v428_v18 = vadd.f32 %v427_v14, %v414_v43  ;;  %v444_v19 = vsel %vm1823_vm3, %v441_v1, %v438_v4  ;;  %v544_v43 = vand.u32 2147483647, %v1808_v39  ;;  %v496_v30 = vmul.f32 0.6931472, %v1195_v38 }
 0x197   : > { %v445_v27 = vadd.f32 %v444_v19, %v431_v47  ;;  %v480_v41 = vsel %vm1831_vm4, %v477_v9, %v474_v21  ;;  %v1197_v45 = vpop.eup %1196 }
 0x198   : > { %v430_v40 = vsub.f32 %v428_v18, %v429_v44  ;;  %v481_v47 = vadd.f32 %v480_v41, %v467_v56  ;;  %v518_v52 = vmul.f32 0.6931472, %v1197_v45  ;;  %v526_v44 = vmul.f32 %v1002_v36, %v1798_v58 }
 0x199   : > { %v447_v48 = vsub.f32 %v445_v27, %v446_v54  ;;  %v502_v34 = vsel %vm1840_vm5, %v499_v29, %v496_v30  ;;  %v543_v54 = vmul.f32 %v1808_v39, %v542_v37  ;;  %v1199_v56 = vpop.eup %1198  ;;  %vm545_vm7 = vcmp.lt.f32.partialorder %v544_v43, 0.0004427343 }
 0x19a   : > { %v483_v1 = vsub.f32 %v481_v47, %v482_v10  ;;  %v503_v7 = vadd.f32 %v502_v34, %v489_v16  ;;  %v524_v53 = vsel %vm1848_vm6, %v521_v42, %v518_v52  ;;  %v540_v62 = vmul.f32 0.6931472, %v1199_v56 }
 0x19b   : > { %v449_v55 = vadd.f32 %v447_v48, %v430_v40  ;;  %v525_v61 = vadd.f32 %v524_v53, %v511_v46 }
 0x19c   : > { %v505_v63 = vsub.f32 %v503_v7, %v504_v51  ;;  %v546_v4 = vsel %vm545_vm7, %v543_v54, %v540_v62 }
 0x19d   : > { %v450_v58 = vmul.f32 %v449_v55, %v1791_v50  ;;  %v527_v39 = vsub.f32 %v525_v61, %v526_v44  ;;  %v547_v11 = vadd.f32 %v546_v4, %v533_v59 }
 0x19e   : > { %v506_v9 = vadd.f32 %v505_v63, %v483_v1 }
 0x19f   : > { %v451_v8 = vadd.f32 %v450_v58, %v448_v60  ;;  %v549_v13 = vsub.f32 %v547_v11, %v548_v2 }
 0x1a0   : > { %v528_v10 = vadd.f32 %v527_v39, %v506_v9 }
 0x1a1   : > { %452 = vst [vmem:[%s1721_s1] sm:$0x1] %v451_v8 }
 0x1a2   : > { %v550_v14 = vadd.f32 %v549_v13, %v528_v10 }
 0x1a4   : > { %v553_v16 = vmul.f32 %v1752_v12, %v550_v14 }
 0x1a6   : > { %v554_v17 = vadd.f32 %v1005_v15, %v553_v16 }
 0x1a8   : > { %1006 = vst [vmem:[%s1721_s1 + $0x3] sm:$0x1] %v554_v17 }
 0x1a9 PF: > { %v560_v50 = vmin.f32 %v1734_v3, 30.0  ;;  %s563_s8 = smul.f32 0.0078125, %s1755_s15  ;;  %v566_v0 = vmin.f32 %v1737_v5, 30.0  ;;  %s1872_s11 = sshll.u32 %s1420_s22, 7  ;;  %v780_v5 = vand.u32 2147483647, %v1740_v6  ;;  %v556_v21 = vadd.f32 %v1778_v32, %v385_v31 }
 0x1aa   : > { %s569_s4 = smul.f32 0.0078125, %s1758_s0  ;;  %s1876_s2 = sld [smem:[#allocation6 + %s1872_s11]]  ;;  %v558_v26 = vadd.f32 %v1780_v33, %v383_v25  ;;  %vm776_vm12 = vcmp.gt.f32.partialorder %v1752_v12, 0.0 }
 0x1ab   : > { %v561_v18 = vmul.f32 1.442695, %v560_v50  ;;  %s581_s14 = sadd.s32 1, %s1872_s11  ;;  %s583_s26 = sadd.s32 2, %s1872_s11  ;;  %v567_v3 = vmul.f32 1.442695, %v566_v0  ;;  %v564_v27 = vstv %s563_s8 }
 0x1ac   : > { %s1880_s18 = sld [smem:[#allocation6 + %s581_s14]]  ;;  %s585_s9 = sadd.s32 3, %s1872_s11  ;;  %v781_v19 = vsub.f32 0.0, %v780_v5  ;;  %v570_v20 = vstv %s569_s4  ;;  %v557_v25 = vmul.f32 0.25, %v556_v21  ;;  %v559_v28 = vmul.f32 0.25, %v558_v26 }
 0x1ad   : > { %s1882_s27 = sld [smem:[#allocation6 + %s583_s26]]  ;;  %1200 = vpow2.f32 %v561_v18  ;;  %s611_s20 = sadd.s32 4, %s1872_s11 }
 0x1ae   : > { %1202 = vpow2.f32 %v567_v3  ;;  %s1887_s10 = sld [smem:[#allocation6 + %s585_s9]]  ;;  %s613_s28 = sadd.s32 5, %s1872_s11  ;;  %v782_v46 = vmul.f32 1.442695, %v781_v19 }
 0x1af   : > { %s1889_s12 = sld [smem:[#allocation6 + %s611_s20]]  ;;  %s615_s30 = sadd.s32 6, %s1872_s11 }
 0x1b0   : > { %s1893_s5 = sld [smem:[#allocation6 + %s613_s28]]  ;;  %s617_s13 = sadd.s32 7, %s1872_s11  ;;  %v592_v29 = vstv %s1876_s2  ;;  %1204 = vpow2.f32 %v782_v46 }
 0x1b1   : > { %s1895_s6 = sld [smem:[#allocation6 + %s615_s30]]  ;;  %s644_s21 = sadd.s32 8, %s1872_s11 }
 0x1b2   : > { %s1901_s26 = sld [smem:[#allocation6 + %s617_s13]]  ;;  %s646_s20 = sadd.s32 9, %s1872_s11  ;;  %v598_v37 = vstv %s1880_s18 }
 0x1b3   : > { %s587_s14 = ssub.f32 %s1882_s27, %s1876_s2  ;;  %s1910_s9 = sld [smem:[#allocation6 + %s644_s21]]  ;;  %v590_v33 = vstv %s1882_s27 }
 0x1b4   : > { %s588_s28 = ssub.f32 %s1887_s10, %s1880_s18  ;;  %s1915_s30 = sld [smem:[#allocation6 + %s646_s20]]  ;;  %v596_v36 = vstv %s1887_s10 }
 0x1b5   : > { %s648_s13 = sadd.s32 10, %s1872_s11  ;;  %s650_s29 = sadd.s32 11, %s1872_s11  ;;  %v624_v38 = vstv %s1889_s12 }
 0x1b6   : > { %s1923_s3 = smul.f32 %s588_s28, %s587_s14  ;;  %s1927_s20 = sld [smem:[#allocation6 + %s648_s13]]  ;;  %v630_v43 = vstv %s1893_s5 }
 0x1b7   : > { %s619_s21 = ssub.f32 %s1895_s6, %s1889_s12  ;;  %v1201_v24 = vpop.eup %1200  ;;  %s1929_s15 = sld [smem:[#allocation6 + %s650_s29]]  ;;  %v622_v42 = vstv %s1895_s6 }
 0x1b8   : > { %v1203_v31 = vpop.eup %1202  ;;  %v565_v32 = vmul.f32 %v1201_v24, %v564_v27  ;;  %s620_s0 = ssub.f32 %s1901_s26, %s1893_s5  ;;  %s677_s8 = sadd.s32 12, %s1872_s11  ;;  %v604_v41 = vstv %s1923_s3  ;;  %v628_v47 = vstv %s1901_s26 }
 0x1b9   : > { %v571_v35 = vmul.f32 %v1203_v31, %v570_v20  ;;  %s1939_s4 = sld [smem:[#allocation6 + %s677_s8]]  ;;  %s679_s29 = sadd.s32 13, %s1872_s11  ;;  %v657_v30 = vstv %s1910_s9 }
 0x1ba   : > { %v572_v40 = vmul.f32 0.5, %v565_v32  ;;  %s621_s14 = smul.f32 %s620_s0, %s619_s21  ;;  %s1945_s2 = sld [smem:[#allocation6 + %s679_s29]]  ;;  %v663_v44 = vstv %s1915_s30  ;;  %v1992_v10 = vpop.eup %1204 }
 0x1bb   : > { %v574_v45 = vmul.f32 0.5, %v571_v35  ;;  %v1947_v48 = vmul.f32 %v571_v35, %v565_v32  ;;  %s681_s18 = sadd.s32 14, %s1872_s11  ;;  %s683_s27 = sadd.s32 15, %s1872_s11 }
 0x1bc   : > { %v1953_v49 = vsub.f32 %v557_v25, %v572_v40  ;;  %v1955_v51 = vadd.f32 %v572_v40, %v557_v25  ;;  %v636_v52 = vstv %s621_s14  ;;  %s1958_s3 = sld [smem:[#allocation6 + %s681_s18]]  ;;  %s652_s12 = ssub.f32 %s1927_s20, %s1910_s9  ;;  %v655_v9 = vstv %s1927_s20 }
 0x1bd   : > { %s1960_s10 = sld [smem:[#allocation6 + %s683_s27]]  ;;  %v1962_v55 = vsub.f32 %v559_v28, %v574_v45  ;;  %v1964_v34 = vadd.f32 %v574_v45, %v559_v28  ;;  %v605_v57 = vadd.f32 %v604_v41, %v1947_v48  ;;  %v637_v59 = vadd.f32 %v636_v52, %v1947_v48  ;;  %s710_s5 = sadd.s32 16, %s1872_s11 }
 0x1be   : > { %v591_v54 = vmin.f32 %v1955_v51, %v590_v33  ;;  %v593_v56 = vmax.f32 %v1953_v49, %v592_v29  ;;  %v623_v60 = vmin.f32 %v1955_v51, %v622_v42  ;;  %v625_v1 = vmax.f32 %v1953_v49, %v624_v38  ;;  %s653_s6 = ssub.f32 %s1929_s15, %s1915_s30  ;;  %s1977_s26 = sld [smem:[#allocation6 + %s710_s5]] }
 0x1bf   : > { %v597_v7 = vmin.f32 %v1964_v34, %v596_v36  ;;  %v599_v53 = vmax.f32 %v1962_v55, %v598_v37  ;;  %v606_v58 = vadd.f32 1e-09, %v605_v57  ;;  %v629_v61 = vmin.f32 %v1964_v34, %v628_v47  ;;  %s712_s9 = sadd.s32 17, %s1872_s11  ;;  %s714_s28 = sadd.s32 18, %s1872_s11 }
 0x1c0   : > { %v594_v62 = vsub.f32 %v591_v54, %v593_v56  ;;  %v626_v63 = vsub.f32 %v623_v60, %v625_v1  ;;  %v631_v2 = vmax.f32 %v1962_v55, %v630_v43  ;;  %v638_v8 = vadd.f32 1e-09, %v637_v59  ;;  %s654_s30 = smul.f32 %s653_s6, %s652_s12  ;;  %s1985_s13 = sld [smem:[#allocation6 + %s712_s9]] }
 0x1c1   : > { %v600_v39 = vsub.f32 %v597_v7, %v599_v53  ;;  %v607_v4 = vmul.f32 0.7, %v606_v58  ;;  %v658_v11 = vmax.f32 %v1953_v49, %v657_v30  ;;  %s1989_s21 = sld [smem:[#allocation6 + %s714_s28]]  ;;  %s716_s0 = sadd.s32 19, %s1872_s11  ;;  %v656_v50 = vmin.f32 %v1955_v51, %v655_v9 }
 0x1c2   : > { %v595_v13 = vmax.f32 %v594_v62, 0.0  ;;  %v627_v14 = vmax.f32 %v626_v63, 0.0  ;;  %v632_v15 = vsub.f32 %v629_v61, %v631_v2  ;;  %v639_v16 = vmul.f32 0.7, %v638_v8  ;;  %s685_s8 = ssub.f32 %s1958_s3, %s1939_s4  ;;  %s1996_s29 = sld [smem:[#allocation6 + %s716_s0]] }
 0x1c3   : > { %v601_v17 = vmax.f32 %v600_v39, 0.0  ;;  %v661_v0 = vstv %s1929_s15  ;;  %v664_v18 = vmax.f32 %v1962_v55, %v663_v44  ;;  %s686_s20 = ssub.f32 %s1960_s10, %s1945_s2  ;;  %s743_s14 = sadd.s32 20, %s1872_s11  ;;  %v669_v19 = vstv %s654_s30 }
 0x1c4   : > { %v633_v3 = vmax.f32 %v632_v15, 0.0  ;;  %v662_v5 = vmin.f32 %v1964_v34, %v661_v0  ;;  %v688_v21 = vstv %s1958_s3  ;;  %s2006_s18 = sld [smem:[#allocation6 + %s743_s14]]  ;;  %s745_s27 = sadd.s32 21, %s1872_s11  ;;  %v659_v46 = vsub.f32 %v656_v50, %v658_v11 }
 0x1c5   : > { %v602_v26 = vmul.f32 %v601_v17, %v595_v13  ;;  %v670_v27 = vadd.f32 %v669_v19, %v1947_v48  ;;  %s2010_s15 = smul.f32 %s686_s20, %s685_s8  ;;  %v689_v20 = vmin.f32 %v1955_v51, %v688_v21  ;;  %s2013_s12 = sld [smem:[#allocation6 + %s745_s27]]  ;;  %v690_v28 = vstv %s1939_s4 }
 0x1c6   : > { %v634_v24 = vmul.f32 %v633_v3, %v627_v14  ;;  %v665_v25 = vsub.f32 %v662_v5, %v664_v18  ;;  %v694_v31 = vstv %s1960_s10  ;;  %s747_s3 = sadd.s32 22, %s1872_s11  ;;  %s749_s5 = sadd.s32 23, %s1872_s11  ;;  %v660_v33 = vmax.f32 %v659_v46, 0.0 }
 0x1c7   : > { %v603_v32 = vmul.f32 1.7, %v602_v26  ;;  %v671_v29 = vadd.f32 1e-09, %v670_v27  ;;  %v691_v35 = vmax.f32 %v1953_v49, %v690_v28  ;;  %s718_s6 = ssub.f32 %s1989_s21, %s1977_s26  ;;  %s2022_s9 = sld [smem:[#allocation6 + %s747_s3]]  ;;  %v695_v38 = vmin.f32 %v1964_v34, %v694_v31 }
 0x1c8   : > { %v635_v36 = vmul.f32 1.7, %v634_v24  ;;  %v666_v37 = vmax.f32 %v665_v25, 0.0  ;;  %v696_v40 = vstv %s1945_s2  ;;  %s719_s28 = ssub.f32 %s1996_s29, %s1985_s13  ;;  %s2028_s30 = sld [smem:[#allocation6 + %s749_s5]]  ;;  %v784_v43 = vadd.f32 1.0, %v1992_v10 }
 0x1c9   : > { %vm608_vm8 = vcmp.le.f32.partialorder %v603_v32, %v607_v4  ;;  %v692_v41 = vsub.f32 %v689_v20, %v691_v35  ;;  %v697_v42 = vmax.f32 %v1962_v55, %v696_v40  ;;  %v672_v47 = vmul.f32 0.7, %v671_v29  ;;  %s2205_s8 = sld [smem:[#allocation28_spill]]  ;;  %s2206_s20 = sand.u32 1, %s1396_s16  }
 0x1ca   : > { %vm640_vm9 = vcmp.le.f32.partialorder %v635_v36, %v639_v16  ;;  %v667_v45 = vmul.f32 %v666_v37, %v660_v33  ;;  %v702_v30 = vstv %s2010_s15  ;;  %s720_s11 = smul.f32 %s719_s28, %s718_s6  ;;  %v1008_v52 = vsel %vm608_vm8, 1.0, %v1441_v22  ;;  %s2084_s14 = scalar_lea.sflag [#allocation4], %s2206_s20 }
 0x1cb   : > { %v693_v44 = vmax.f32 %v692_v41, 0.0  ;;  %v698_v57 = vsub.f32 %v695_v38, %v697_v42  ;;  %v703_v59 = vadd.f32 %v702_v30, %v1947_v48  ;;  %v1009_v54 = vsel %vm640_vm9, 1.0, %v1441_v22  ;;  %p2207_p0 = scmp.ne.s32.totalorder %s2176_s7, 0 }
 0x1cc   : > { %v668_v56 = vmul.f32 1.7, %v667_v45  ;;  %v721_v60 = vstv %s1989_s21  ;;  %v723_v1 = vstv %s1977_s26  ;;  %v727_v62 = vstv %s1996_s29  ;;  %s1023_s26 = sshll.u32 %s1420_s22, 6  ;;  %s1442_s22 = smov [#allocation11]  }
 0x1cd   : > { %v699_v7 = vmax.f32 %v698_v57, 0.0  ;;  %v704_v53 = vadd.f32 1e-09, %v703_v59  ;;  %v722_v58 = vmin.f32 %v1955_v51, %v721_v60  ;;  %v724_v61 = vmax.f32 %v1953_v49, %v723_v1  ;;  %s751_s4 = ssub.f32 %s2022_s9, %s2006_s18  ;;  %s1302_s27 = sshll.u32 %s1442_s22, 4  ;;  %s1303_s27 = int_to_ptr.vmem [resolvable:$false] %s1302_s27 }
 0x1ce   : > { %vm673_vm10 = vcmp.le.f32.partialorder %v668_v56, %v672_v47  ;;  %v729_v63 = vstv %s1985_s13  ;;  %v735_v2 = vstv %s720_s11  ;;  %s752_s2 = ssub.f32 %s2028_s30, %s2013_s12  ;;  %v643_v8 = vmul.f32 %v1009_v54, %v1008_v52  ;;  %s821_s13 = sshll.u32 %s1721_s1, 4  ;;  %s2079_s13 = int_to_ptr.vmem [resolvable:$true] %s821_s13 }
 0x1cf   : > { %v700_v39 = vmul.f32 %v699_v7, %v693_v44  ;;  %v705_v4 = vmul.f32 0.7, %v704_v53  ;;  %v725_v9 = vsub.f32 %v722_v58, %v724_v61  ;;  %v1010_v11 = vsel %vm673_vm10, 1.0, %v1441_v22  ;;  %s2077_s29 = scalar_lea.hbm %s2205_s8, %s1023_s26  ;;  %s1304_s15 = scalar_lea.vmem %s1303_s27, 128 }
 0x1d0   : > { %v728_v13 = vmin.f32 %v1964_v34, %v727_v62  ;;  %v730_v14 = vmax.f32 %v1962_v55, %v729_v63  ;;  %v736_v15 = vadd.f32 %v735_v2, %v1947_v48  ;;  %s753_s10 = smul.f32 %s752_s2, %s751_s4  ;;  %v754_v50 = vstv %s2022_s9  ;;  %p1305_p4 = scmp.lt.s32.totalorder %s2079_s13, %s1303_s27 }
 0x1d1   : > { %v701_v16 = vmul.f32 1.7, %v700_v39  ;;  %v726_v17 = vmax.f32 %v725_v9, 0.0  ;;  %v756_v0 = vstv %s2006_s18  ;;  %v755_v5 = vmin.f32 %v1955_v51, %v754_v50  ;;  %s1298_s18 = scalar_lea.vmem %s2079_s13, 64 }
 0x1d2   : > { %v731_v18 = vsub.f32 %v728_v13, %v730_v14  ;;  %v737_v3 = vadd.f32 1e-09, %v736_v15  ;;  %v757_v19 = vmax.f32 %v1953_v49, %v756_v0  ;;  %v760_v21 = vstv %s2028_s30  ;;  %p1299_p12 = scmp.ne.s32.totalorder %s2079_s13, %s1298_s18  ;;  %p1306_p13 = scmp.lt.s32.totalorder %s1304_s15, %s1298_s18 }
 0x1d3   : > { %vm706_vm11 = vcmp.le.f32.partialorder %v701_v16, %v705_v4  ;;  %v762_v26 = vstv %s2013_s12  ;;  %v768_v46 = vstv %s753_s10  ;;  %v676_v24 = vmul.f32 %v1010_v11, %v643_v8 }
 0x1d4   : > { %v732_v27 = vmax.f32 %v731_v18, 0.0  ;;  %v758_v20 = vsub.f32 %v755_v5, %v757_v19  ;;  %v761_v25 = vmin.f32 %v1964_v34, %v760_v21  ;;  %v763_v28 = vmax.f32 %v1962_v55, %v762_v26  ;;  %p1300_p9 = pnand %p1299_p12, %p2207_p0  ;;  %p1307_p2 = por %p1306_p13, %p1305_p4 }
 0x1d5   : > { %v769_v31 = vadd.f32 %v768_v46, %v1947_v48  ;;  %v1011_v32 = vsel %vm706_vm11, 1.0, %v1441_v22  ;;  %v738_v29 = vmul.f32 0.7, %v737_v3  ;;  %1206 = vlog2.f32 %v784_v43 }
 0x1d6   : > { %v733_v33 = vmul.f32 %v732_v27, %v726_v17  ;;  %v759_v51 = vmax.f32 %v758_v20, 0.0  ;;  %v764_v49 = vsub.f32 %v761_v25, %v763_v28  ;;  %v787_v36 = vmul.f32 -0.5, %v1992_v10  ;;  %p1301_p1 = pneg %p1300_p9 }
 0x1d7   : > { %v770_v35 = vadd.f32 1e-09, %v769_v31  ;;  %v709_v38 = vmul.f32 %v1011_v32, %v676_v24  ;;  %v1014_v42 = vsel %vm776_vm12, 1.0, %v1441_v22  ;;  %v790_v43 = vand.u32 2147483647, %v1992_v10 }
 0x1d8   : > { %v734_v37 = vmul.f32 1.7, %v733_v33  ;;  %v765_v40 = vmax.f32 %v764_v49, 0.0  ;;  %v788_v41 = vadd.f32 1.0, %v787_v36  ;;  %v798_v52 = vsub.f32 1.0, %v1014_v42  ;;  %p1308_p11 = pnand %p1307_p2, %p1301_p1 }
 0x1d9   : > { %v771_v48 = vmul.f32 0.7, %v770_v35  ;;  %v779_v59 = vmax.f32 %v1740_v6, 0.0  ;;  %vm791_vm15 = vcmp.lt.f32.partialorder %v790_v43, 0.0004427343  ;;  %v794_v60 = vmul.f32 %v1014_v42, %v1740_v6 }
 0x1da   : > { %vm739_vm13 = vcmp.le.f32.partialorder %v734_v37, %v738_v29  ;;  %v766_v34 = vmul.f32 %v765_v40, %v759_v51  ;;  %v789_v30 = vmul.f32 %v1992_v10, %v788_v41 }
 0x1db   : > { %v1012_v55 = vsel %vm739_vm13, 1.0, %v1441_v22 }
 0x1dc   : > { %v742_v45 = vmul.f32 %v1012_v55, %v709_v38  ;;  %v767_v47 = vmul.f32 1.7, %v766_v34 }
 0x1de   : > { %vm772_vm14 = vcmp.le.f32.partialorder %v767_v47, %v771_v48 }
 0x1df   : > { %v1207_v44 = vpop.eup %1206  ;;  %v1013_v57 = vsel %vm772_vm14, 1.0, %v1441_v22  ;;  %v1015_v22 = vld [vmem:[%s1721_s1 + $0x2] sm:$0x1] }
 0x1e0   : > { %v775_v54 = vmul.f32 %v1013_v57, %v742_v45  ;;  %v786_v56 = vmul.f32 0.6931472, %v1207_v44 }
 0x1e2   : > { %v792_v1 = vsel %vm791_vm15, %v789_v30, %v786_v56  ;;  %v799_v7 = vmul.f32 %v798_v52, %v775_v54 }
 0x1e3   : > { %v793_v53 = vadd.f32 %v792_v1, %v779_v59 }
 0x1e4   : > { %v800_v10 = vmul.f32 %v1767_v23, %v799_v7 }
 0x1e5   : > { %v795_v58 = vsub.f32 %v793_v53, %v794_v60 }
 0x1e6   : > { %v801_v61 = vadd.f32 %v1752_v12, %v800_v10 }
 0x1e8   : > { %v802_v62 = vmul.f32 %v801_v61, %v795_v58 }
 0x1ea   : > { %v803_v63 = vadd.f32 %v1015_v22, %v802_v62 }
 0x1ec   : > { %1016 = vst [vmem:[%s1721_s1 + $0x2] sm:$0x1] %v803_v63 }
 0x1ed   : > { %1311 = shalt.err (!%p1308_p11)
}
 0x1ee   : > { %s1312_s1 = scalar_lea.hbm %s2077_s29, 64  ;;  %s1316_s5 = scalar_lea.hbm %s2205_s8, 128 }
 0x1ef   : > { %p1313_p6 = scmp.ne.s32.totalorder %s2077_s29, %s1312_s1  ;;  %p1317_p5 = scmp.lt.u32.totalorder %s2077_s29, %s2205_s8 }
 0x1f0   : > { %p1318_p3 = scmp.lt.u32.totalorder %s1316_s5, %s1312_s1  ;;  %p1320_p12 = scmp.lt.u32.totalorder %s1312_s1, %s2077_s29 }
 0x1f1   : > { %p1314_p7 = pnand %p1313_p6, %p2207_p0 }
 0x1f2   : > { %p1319_p10 = por %p1318_p3, %p1317_p5 }
 0x1f3   : > { %p1315_p8 = pneg %p1314_p7 }
 0x1f4   : > { %p1321_p9 = por %p1320_p12, %p1319_p10 }
 0x1f6   : > { %p1322_p1 = pnand %p1321_p9, %p1315_p8 }
 0x1f8   : > { %1325 = shalt.err (!%p1322_p1)
}
 0x1f9   : > { %s1443_s28 = smov 16   ;;  %s1444_s30 = smov 1  }
 0x1fa   : > { %1046 = dma.vmem_to_hbm [thread:$0]  (%p2207_p0), %s2079_s13, 64, %s2077_s29, %s2084_s14, %s1443_s28, %s1443_s28, %s1444_s30  }
 0x1fb PF: > { %s2208_s11 = sld [smem:[#allocation19_spill]]  ;;  %s2209_s4 = sld [smem:[#allocation17_spill]] }
 0x1fc   : > { %s2210_s2 = sld [smem:[#allocation20_spill]] }
 0x201   : > { %p1071_p4 = scmp.ge.s32.totalorder %s2208_s11, 2  ;;  %s836_s10 = sand.u32 1, %s2209_s4  }
 0x202   : > { %p2211_p13 = scmp.ne.s32.totalorder %s2210_s2, 0  ;;  %s837_s26 = scalar_lea.sflag [#allocation4], %s836_s10 }
 0x204   : > { %p1063_p2 = pnand %p1071_p4, %p2211_p13 }
 0x206   : > { %1387 = dma.done.wait (!%p1063_p2), %s837_s26, 64  }
 0x207   : > { %1389 = vsyncadd (!%p1063_p2), %s837_s26, 4294967232  ;;  %s25_s0 = sadd.s32 1, %s2208_s11   ;;  %s2212_s7 = sld [smem:[#allocation18_spill]] }
 0x208   : > { %p22_p11 = scmp.ge.s32.totalorder %s25_s0, 8   ;;  %s2213_s20 = sld [smem:[#allocation23_spill]] }
 0x209   : > { %s2214_s13 = sld [smem:[#allocation21_spill]]  ;;  %s2215_s29 = sld [smem:[#allocation22_spill]] }
 0x20a   : > { %s2216_s15 = smov %s1396_s16  ;;  %s2217_s16 = smov %s1400_s17 }
 0x20b   : > { %s2218_s17 = smov %s1615_s25  ;;  %s2219_s18 = smov %s1408_s19 }
 0x20c   : > { %s2221_s21 = smov %s1424_s23  ;;  %s2222_s22 = smov %s1428_s24 }
 0x20d   : > { %s2220_s19 = smov %s2212_s7  ;;  %s2225_s25 = smov %s25_s0 }
 0x20e   :  { %24 = sbr.rel (!%p22_p11) target bundleno = 19 (0x13), region = 131 }
 0x20f   : > { %s2223_s23 = smov %s2214_s13  ;;  %s2224_s24 = smov %s2215_s29 }
 0x215   :  { %842 = vsyncpa [#allocation3], 1 }
 0x216   :  { %844 = vsyncpa [#allocation3 + $0x1], 1 }
 0x217   :  { %845 = vsyncpa [#allocation10], 1 }
 0x218   :  { %847 = vsyncpa [#allocation10 + $0x1], 1 }
 0x219   :  { %848 = vsyncpa [#allocation4], 1 }
 0x21a   :  { %850 = vsyncpa [#allocation4 + $0x1], 1 }
 0x21b   :  { %851 = vsyncpa [#allocation5], 1 }
 0x21c   :  { %853 = vsyncpa [#allocation5 + $0x1], 1 }
 0x21d   :  { %854 = vsyncpa [#allocation7], 1 }

</bundles_post_ra>
